<compile_context>
chip_gen: v6e
topology: v6e:2x2x1
jax: 0.10.0
libtpu: 0.0.40
codegen_flags: <defaults>
</compile_context>

<pallas_src>
import functools
import math

import jax
import jax.numpy as jnp
from jax.experimental import pallas as pl
from jax.experimental.pallas import tpu as pltpu


def _round_up(x, m):
    return ((x + m - 1) // m) * m


def _pad_to(x, shape):
    pads = [(0, s - d) for d, s in zip(x.shape, shape)]
    return jnp.pad(x, pads)


def _pad_gates_last(w, H, Hp):
    """Pad each of the 3 gate blocks (r, z, n) along the last axis from H to Hp."""
    parts = []
    for g in range(3):
        blk = w[..., g * H:(g + 1) * H]
        parts.append(jnp.pad(blk, [(0, 0)] * (w.ndim - 1) + [(0, Hp - H)]))
    return jnp.concatenate(parts, axis=-1)


def _largest_divisor_leq(n, target):
    best = 1
    for c in range(1, min(n, target) + 1):
        if n % c == 0:
            best = c
    return best


def _pick_lane_tile(total, target):
    """Largest multiple of 128 that divides `total` (a multiple of 128) and is <= target."""
    best = 128
    t = 256
    while t <= min(target, total):
        if total % t == 0:
            best = t
        t += 128
    return best


def _char_rnn_kernel(x_ref, w_ih_ref, w_hh_ref, b_gi_ref, b_hn_ref, h0_ref,
                     w_out_ref, b_out_ref,
                     words_ref, hN_ref,
                     gi_ref, hs_ref,
                     *, chunk_s, chunk_b, hidden_p, unroll):
    """One grid point = (batch_chunk bc, time_chunk k, vocab_tile j).

    Shapes seen by the kernel (padded):
      x_ref     : (chunk_s, chunk_b, Ep)   embeddings for this (bc, k), mxu_dtype
      w_ih_ref  : (Ep, 3Hp)                mxu_dtype, gate order r,z,n
      w_hh_ref  : (Hp, 3Hp)                f32 (recurrence kept in f32)
      b_gi_ref  : (1, 3Hp)                 f32, b_ih with b_hh r/z pre-folded
      b_hn_ref  : (1, Hp)                  f32
      h0_ref    : (chunk_b, Hp)            f32
      w_out_ref : (Hp, TILE_V)             mxu_dtype
      b_out_ref : (1, TILE_V)              f32
      words_ref : (chunk_s, chunk_b, TILE_V)  f32 logits block
      hN_ref    : (chunk_b, Hp)            f32; resident carry of the hidden state
      gi_ref    : (chunk_s, chunk_b, 3Hp)  f32 scratch (hoisted input projection, 1 chunk)
      hs_ref    : (chunk_s, chunk_b, Hp)   mxu_dtype scratch (per-step hidden states)
    """
    Hp = hidden_p
    k = pl.program_id(1)
    j = pl.program_id(2)

    # --- recurrence phase: once per (bc, k), at the first vocab tile -------------
    @pl.when(j == 0)
    def _recurrence():
        # (1) Hoisted input projection for this time chunk (one MXU matmul).
        x2d = x_ref[...].reshape(chunk_s * chunk_b, x_ref.shape[-1])
        gi = (jnp.dot(x2d, w_ih_ref[...], preferred_element_type=jnp.float32)
              + b_gi_ref[...])
        gi_ref[...] = gi.reshape(chunk_s, chunk_b, 3 * Hp)

        # hN_ref is the resident hidden-state carry for this batch chunk.
        @pl.when(k == 0)
        def _init():
            hN_ref[...] = h0_ref[...]

        b_hn = jnp.broadcast_to(b_hn_ref[...], (chunk_b, Hp))  # hoisted (loop-invariant)

        def step(t, h_prev):
            gi_t = gi_ref[t]                                   # (chunk_b, 3Hp) f32
            # w_hh read per-step from VMEM (not pinned in vregs across the loop).
            gh = jnp.dot(h_prev, w_hh_ref[...],
                         preferred_element_type=jnp.float32)   # f32 recurrent matmul
            r = jax.nn.sigmoid(gi_t[:, 0:Hp] + gh[:, 0:Hp])
            z = jax.nn.sigmoid(gi_t[:, Hp:2 * Hp] + gh[:, Hp:2 * Hp])
            # PyTorch GRU: n = tanh(W_in x + b_in + r * (W_hn h + b_hn))
            n = jnp.tanh(gi_t[:, 2 * Hp:3 * Hp] + r * (gh[:, 2 * Hp:3 * Hp] + b_hn))
            h_new = (1.0 - z) * n + z * h_prev                 # (chunk_b, Hp) f32
            hs_ref[t] = h_new.astype(hs_ref.dtype)
            return h_new

        h_final = jax.lax.fori_loop(0, chunk_s, step, hN_ref[...], unroll=unroll)
        hN_ref[...] = h_final

    # --- output projection for this (time chunk, vocab tile) ---------------------
    hs2d = hs_ref[...].reshape(chunk_s * chunk_b, Hp)
    logits = (jnp.dot(hs2d, w_out_ref[...], preferred_element_type=jnp.float32)
              + b_out_ref[...])
    words_ref[...] = logits.reshape(chunk_s, chunk_b, logits.shape[-1])


def char_rnn_forward(sentences, params, hidden=None, *,
                     mxu_dtype=jnp.bfloat16, tile_v=512, target_chunk_s=32,
                     batch_chunks=1):
    """Forward pass matching CharRNN.forward (n_layers=1, bidir=False).

    Args:
      sentences:    [B, S] int32 token ids
      params:       dict of weights (see init_params)
      hidden:       optional [1, B, H] initial hidden state
      mxu_dtype:    dtype fed to the big projection matmuls (bf16 is native on all gens;
                    the recurrent h@W_hh matmul always stays f32)
      tile_v:       target vocab tile width for the output projection (multiple of 128)
      target_chunk_s: target number of timesteps per recurrence chunk
      batch_chunks: leading 'parallel' grid axis; set 2 on v7x to use both TensorCores
    Returns:
      words:  [B, S, vocab_size] float32
      hidden: [1, B, H] float32
    """
    B, S = sentences.shape
    V, E = params["embedding"].shape
    H = params["w_hh_t"].shape[0]

    f32 = jnp.float32
    itm = jnp.dtype(mxu_dtype).itemsize
    b_align = 8 if itm == 4 else 16            # sublane pack: 8 rows f32, 16 rows bf16
    Bp = _round_up(B, b_align * batch_chunks)
    chunk_b = Bp // batch_chunks
    Ep = _round_up(E, 128)
    Hp = _round_up(H, 128)
    Vp = _round_up(V, 128)

    tile_v = _pick_lane_tile(Vp, tile_v)
    chunk_s = _largest_divisor_leq(S, target_chunk_s)
    num_k = S // chunk_s
    num_j = Vp // tile_v
    unroll = max(u for u in (1, 2, 4, 8) if chunk_s % u == 0)

    # ---- zero-padded parameters (padding is exact: padded rows/cols are zero) ----
    emb_p = _pad_to(params["embedding"].astype(f32), (V, Ep))
    w_ih_p = _pad_gates_last(_pad_to(params["w_ih_t"], (Ep, 3 * H)), H, Hp).astype(mxu_dtype)
    w_hh_p = _pad_gates_last(_pad_to(params["w_hh_t"], (Hp, 3 * H)), H, Hp).astype(f32)
    w_out_p = _pad_to(params["w_out_t"], (Hp, Vp)).astype(mxu_dtype)
    b_out_p = _pad_to(params["b_out"], (1, Vp)).astype(f32)

    b_ih, b_hh = params["b_ih"], params["b_hh"]
    # Pre-sum the r/z biases (b_hh_n stays separate: it is gated by r).
    b_gi = jnp.concatenate(
        [b_ih[:, :2 * H] + b_hh[:, :2 * H], b_ih[:, 2 * H:]], axis=-1)      # (1, 3H)
    b_gi_p = _pad_gates_last(b_gi, H, Hp).astype(f32)                       # (1, 3Hp)
    b_hn_p = _pad_to(b_hh[:, 2 * H:], (1, Hp)).astype(f32)                  # (1, Hp)

    # ---- activations: time-major gather (S, Bp, Ep), no [B,S,E] transpose --------
    emb_tm = jnp.take(emb_p, sentences.T, axis=0)                # (S, B, Ep)
    x = _pad_to(emb_tm, (S, Bp, Ep)).astype(mxu_dtype)

    if hidden is None:
        h0 = jnp.zeros((Bp, Hp), f32)
    else:
        h0 = _pad_to(hidden.reshape(B, H).astype(f32), (Bp, Hp))

    # ---- explicit scoped-VMEM budget (double-buffered blocks + scratch) ----------
    vmem = 0
    vmem += 2 * chunk_s * chunk_b * Ep * itm            # x block
    vmem += 2 * Ep * 3 * Hp * itm                       # w_ih
    vmem += 2 * Hp * 3 * Hp * 4                         # w_hh (f32)
    vmem += 2 * 8 * (3 * Hp + Hp) * 4                   # biases (sublane-padded)
    vmem += 2 * chunk_b * Hp * 4                        # h0
    vmem += 2 * Hp * tile_v * itm                       # w_out tile
    vmem += 2 * 8 * tile_v * 4                          # b_out tile
    vmem += 2 * chunk_s * chunk_b * tile_v * 4          # words tile
    vmem += 2 * chunk_b * Hp * 4                        # hN
    vmem += chunk_s * chunk_b * 3 * Hp * 4              # gi scratch
    vmem += chunk_s * chunk_b * Hp * itm                # hs scratch
    vmem_limit = int(min(max(int(vmem * 1.5) + (4 << 20), 16 << 20), 64 << 20))

    kernel = functools.partial(
        _char_rnn_kernel, chunk_s=chunk_s, chunk_b=chunk_b, hidden_p=Hp, unroll=unroll)

    words3d, h_final = pl.pallas_call(
        kernel,
        out_shape=(
            jax.ShapeDtypeStruct((S, Bp, Vp), f32),
            jax.ShapeDtypeStruct((Bp, Hp), f32),
        ),
        grid_spec=pltpu.PrefetchScalarGridSpec(
            num_scalar_prefetch=0,
            grid=(batch_chunks, num_k, num_j),
            in_specs=[
                pl.BlockSpec((chunk_s, chunk_b, Ep), lambda bc, k, j: (k, bc, 0)),  # x
                pl.BlockSpec((Ep, 3 * Hp), lambda bc, k, j: (0, 0)),                # w_ih^T
                pl.BlockSpec((Hp, 3 * Hp), lambda bc, k, j: (0, 0)),                # w_hh^T (f32)
                pl.BlockSpec((1, 3 * Hp), lambda bc, k, j: (0, 0)),                 # b_gi
                pl.BlockSpec((1, Hp), lambda bc, k, j: (0, 0)),                     # b_hn
                pl.BlockSpec((chunk_b, Hp), lambda bc, k, j: (bc, 0)),              # h0
                pl.BlockSpec((Hp, tile_v), lambda bc, k, j: (0, j)),                # w_out^T tile
                pl.BlockSpec((1, tile_v), lambda bc, k, j: (0, j)),                 # b_out tile
            ],
            out_specs=[
                pl.BlockSpec((chunk_s, chunk_b, tile_v), lambda bc, k, j: (k, bc, j)),  # words
                pl.BlockSpec((chunk_b, Hp), lambda bc, k, j: (bc, 0)),                  # final h
            ],
            scratch_shapes=[
                pltpu.VMEM((chunk_s, chunk_b, 3 * Hp), jnp.float32),   # gi (one time chunk)
                pltpu.VMEM((chunk_s, chunk_b, Hp), mxu_dtype),         # hs (one time chunk)
            ],
        ),
        compiler_params=pltpu.CompilerParams(
            dimension_semantics=("parallel", "arbitrary", "arbitrary"),
            vmem_limit_bytes=vmem_limit,
        ),
    )(x, w_ih_p, w_hh_p, b_gi_p, b_hn_p, h0, w_out_p, b_out_p)

    # TODO(synk): absorb this transpose into the kernel (batch-major words blocks).
    words = words3d.transpose(1, 0, 2)[:B, :, :V]                  # [B, S, V]
    hidden_out = h_final[:B, :H].reshape(1, B, H)                  # [1, B, H]
    return words, hidden_out


def init_params(key, vocab_size, embed_size, hidden_size):
    """Deterministic synthetic parameter init (shapes match nn.Embedding/nn.GRU/nn.Linear)."""
    ks = jax.random.split(key, 8)
    scale = 0.1
    # PyTorch shapes: weight_ih_l0 [3H, E], weight_hh_l0 [3H, H] (gate order r,z,n).
    # We store the transposes for row-major matmuls inside the kernel.
    return {
        "embedding": scale * jax.random.normal(ks[0], (vocab_size, embed_size), jnp.float32),
        "w_ih_t": scale * jax.random.normal(ks[1], (embed_size, 3 * hidden_size), jnp.float32),
        "w_hh_t": scale * jax.random.normal(ks[2], (hidden_size, 3 * hidden_size), jnp.float32),
        "b_ih": scale * jax.random.normal(ks[3], (1, 3 * hidden_size), jnp.float32),
        "b_hh": scale * jax.random.normal(ks[4], (1, 3 * hidden_size), jnp.float32),
        "w_out_t": scale * jax.random.normal(ks[5], (hidden_size, vocab_size), jnp.float32),
        "b_out": scale * jax.random.normal(ks[6], (1, vocab_size), jnp.float32),
    }


def _reference_forward(sentences, params, hidden=None):
    """Pure-JAX reference (PyTorch GRU semantics) for correctness checking."""
    B, S = sentences.shape
    H = params["w_hh_t"].shape[0]
    embeds = jnp.take(params["embedding"], sentences, axis=0)  # [B, S, E]
    h = jnp.zeros((B, H), jnp.float32) if hidden is None else hidden.reshape(B, H)

    def step(h_prev, x_t):
        gi = x_t @ params["w_ih_t"] + params["b_ih"]
        gh = h_prev @ params["w_hh_t"] + params["b_hh"]
        i_r, i_z, i_n = gi[:, :H], gi[:, H:2 * H], gi[:, 2 * H:]
        h_r, h_z, h_n = gh[:, :H], gh[:, H:2 * H], gh[:, 2 * H:]
        r = jax.nn.sigmoid(i_r + h_r)
        z = jax.nn.sigmoid(i_z + h_z)
        n = jnp.tanh(i_n + r * h_n)
        h_new = (1.0 - z) * n + z * h_prev
        return h_new, h_new

    h_final, outs = jax.lax.scan(step, h, jnp.transpose(embeds, (1, 0, 2)))
    outs = jnp.transpose(outs, (1, 0, 2))  # [B, S, H]
    words = outs @ params["w_out_t"] + params["b_out"]
    return words, h_final.reshape(1, B, H)


if __name__ == "__main__":
    # Small shapes consistent with the module's forward: sentences [b, seq_len].
    vocab_size, embed_size, hidden_size = 64, 32, 32
    batch, seq_len = 2, 8

    key = jax.random.PRNGKey(0)
    pkey, skey = jax.random.split(key)
    params = init_params(pkey, vocab_size, embed_size, hidden_size)
    sentences = jax.random.randint(skey, (batch, seq_len), 0, vocab_size, dtype=jnp.int32)

    ref_words, ref_hidden = _reference_forward(sentences, params)

    # f32 MXU path (exact against the pure-f32 reference).
    words, hidden = char_rnn_forward(sentences, params, mxu_dtype=jnp.float32)
    jax.block_until_ready((words, hidden))
    assert words.shape == (batch, seq_len, vocab_size)
    assert hidden.shape == (1, batch, hidden_size)
    assert jnp.allclose(words, ref_words, atol=1e-5, rtol=1e-5)
    assert jnp.allclose(hidden, ref_hidden, atol=1e-5, rtol=1e-5)

    # Default bf16 MXU path (recommended on all generations); recurrence stays f32,
    # so only the two big projection matmuls see bf16 rounding.
    words_bf, hidden_bf = char_rnn_forward(sentences, params)   # mxu_dtype=bfloat16
    jax.block_until_ready((words_bf, hidden_bf))
    assert jnp.allclose(words_bf, ref_words, atol=5e-2, rtol=0)
    assert jnp.allclose(hidden_bf, ref_hidden, atol=5e-2, rtol=0)

    # On v7x, additionally pass batch_chunks=2 to shard the recurrence across both
    # TensorCores (requires batch large enough for two aligned chunks).

    print("KERNEL_OK")
</pallas_src>

<mosaic_0001>
module attributes {stable_mosaic.version = 11 : i64} {
  func.func @_char_rnn_kernel(%arg0: i32, %arg1: i32, %arg2: i32, %arg3: memref<8x8x128xf32, #tpu.memory_space<vmem>>, %arg4: memref<128x384xf32, #tpu.memory_space<vmem>>, %arg5: memref<128x384xf32, #tpu.memory_space<vmem>>, %arg6: memref<1x384xf32, #tpu.memory_space<vmem>>, %arg7: memref<1x128xf32, #tpu.memory_space<vmem>>, %arg8: memref<8x128xf32, #tpu.memory_space<vmem>>, %arg9: memref<128x128xf32, #tpu.memory_space<vmem>>, %arg10: memref<1x128xf32, #tpu.memory_space<vmem>>, %arg11: memref<8x8x128xf32, #tpu.memory_space<vmem>>, %arg12: memref<8x128xf32, #tpu.memory_space<vmem>>, %arg13: memref<8x8x384xf32, #tpu.memory_space<vmem>>, %arg14: memref<8x8x128xf32, #tpu.memory_space<vmem>>) attributes {dimension_semantics = [#tpu.dimension_semantics<parallel>, #tpu.dimension_semantics<arbitrary>, #tpu.dimension_semantics<arbitrary>], iteration_bounds = array<i64: 1, 1, 1>, scalar_prefetch = 0 : i64, scratch_operands = 2 : i64, tpu.core_type = #tpu.core_type<tc>, window_params = [{transform_indices = @transform_0, window_bounds = array<i64: 8, 8, 128>}, {pipeline_mode = #tpu.pipeline_mode<synchronous>, transform_indices = @transform_1, window_bounds = array<i64: 128, 384>}, {pipeline_mode = #tpu.pipeline_mode<synchronous>, transform_indices = @transform_2, window_bounds = array<i64: 128, 384>}, {pipeline_mode = #tpu.pipeline_mode<synchronous>, transform_indices = @transform_3, window_bounds = array<i64: 1, 384>}, {pipeline_mode = #tpu.pipeline_mode<synchronous>, transform_indices = @transform_4, window_bounds = array<i64: 1, 128>}, {transform_indices = @transform_5, window_bounds = array<i64: 8, 128>}, {transform_indices = @transform_6, window_bounds = array<i64: 128, 128>}, {transform_indices = @transform_7, window_bounds = array<i64: 1, 128>}, {transform_indices = @transform_8, window_bounds = array<i64: 8, 8, 128>}, {transform_indices = @transform_9, window_bounds = array<i64: 8, 128>}]} {
    %c0_i32 = arith.constant 0 : i32
    %0 = arith.cmpi eq, %arg2, %c0_i32 : i32
    %1 = arith.extui %0 : i1 to i32
    %c0_i32_0 = arith.constant 0 : i32
    %2 = arith.cmpi ne, %1, %c0_i32_0 : i32
    scf.if %2 {
      %c0_10 = arith.constant 0 : index
      %c0_11 = arith.constant 0 : index
      %c0_12 = arith.constant 0 : index
      %12 = vector.load %arg3[%c0_10, %c0_11, %c0_12] : memref<8x8x128xf32, #tpu.memory_space<vmem>>, vector<8x8x128xf32>
      %13 = vector.shape_cast %12 : vector<8x8x128xf32> to vector<64x128xf32>
      %c0_13 = arith.constant 0 : index
      %c0_14 = arith.constant 0 : index
      %14 = vector.load %arg4[%c0_13, %c0_14] : memref<128x384xf32, #tpu.memory_space<vmem>>, vector<128x384xf32>
      %cst_15 = arith.constant dense<0.000000e+00> : vector<64x384xf32>
      %15 = tpu.matmul %13, %14, %cst_15 {dimension_numbers = #tpu.dot_dimension_numbers<[1], [0], [0], [1], [0, 0, 1, 1], [], []>} : vector<64x128xf32>, vector<128x384xf32>, vector<64x384xf32> -> vector<64x384xf32>
      %c0_16 = arith.constant 0 : index
      %c0_17 = arith.constant 0 : index
      %16 = vector.load %arg6[%c0_16, %c0_17] : memref<1x384xf32, #tpu.memory_space<vmem>>, vector<1x384xf32>
      %17 = vector.broadcast %16 : vector<1x384xf32> to vector<64x384xf32>
      %18 = arith.addf %15, %17 : vector<64x384xf32>
      %19 = vector.shape_cast %18 : vector<64x384xf32> to vector<8x8x384xf32>
      %c0_18 = arith.constant 0 : index
      %c0_19 = arith.constant 0 : index
      %c0_20 = arith.constant 0 : index
      %20 = vector.load %arg13[%c0_18, %c0_19, %c0_20] : memref<8x8x384xf32, #tpu.memory_space<vmem>>, vector<8x8x384xf32>
      tpu.vector_store %arg13[%c0_18, %c0_19, %c0_20], %19 {strides = array<i32>} : memref<8x8x384xf32, #tpu.memory_space<vmem>>, vector<8x8x384xf32>,
      %c0_i32_21 = arith.constant 0 : i32
      %21 = arith.cmpi eq, %arg1, %c0_i32_21 : i32
      %22 = arith.extui %21 : i1 to i32
      %c0_i32_22 = arith.constant 0 : i32
      %23 = arith.cmpi ne, %22, %c0_i32_22 : i32
      scf.if %23 {
        %c0_110 = arith.constant 0 : index
        %c0_111 = arith.constant 0 : index
        %317 = vector.load %arg8[%c0_110, %c0_111] : memref<8x128xf32, #tpu.memory_space<vmem>>, vector<8x128xf32>
        %c0_112 = arith.constant 0 : index
        %c0_113 = arith.constant 0 : index
        %318 = vector.load %arg12[%c0_112, %c0_113] : memref<8x128xf32, #tpu.memory_space<vmem>>, vector<8x128xf32>
        tpu.vector_store %arg12[%c0_112, %c0_113], %317 {strides = array<i32>} : memref<8x128xf32, #tpu.memory_space<vmem>>, vector<8x128xf32>,
      } else {
      }
      %c0_23 = arith.constant 0 : index
      %c0_24 = arith.constant 0 : index
      %24 = vector.load %arg7[%c0_23, %c0_24] : memref<1x128xf32, #tpu.memory_space<vmem>>, vector<1x128xf32>
      %25 = vector.shape_cast %24 : vector<1x128xf32> to vector<1x128xf32>
      %26 = vector.broadcast %25 : vector<1x128xf32> to vector<8x128xf32>
      %c0_25 = arith.constant 0 : index
      %c0_26 = arith.constant 0 : index
      %27 = vector.load %arg12[%c0_25, %c0_26] : memref<8x128xf32, #tpu.memory_space<vmem>>, vector<8x128xf32>
      %c0_i32_27 = arith.constant 0 : i32
      %28 = arith.index_cast %c0_i32_27 : i32 to index
      %c0_28 = arith.constant 0 : index
      %c0_29 = arith.constant 0 : index
      %29 = vector.load %arg13[%28, %c0_28, %c0_29] : memref<8x8x384xf32, #tpu.memory_space<vmem>>, vector<1x8x384xf32>
      %30 = vector.shape_cast %29 : vector<1x8x384xf32> to vector<8x384xf32>
      %c0_30 = arith.constant 0 : index
      %c0_31 = arith.constant 0 : index
      %31 = vector.load %arg5[%c0_30, %c0_31] : memref<128x384xf32, #tpu.memory_space<vmem>>, vector<128x384xf32>
      %cst_32 = arith.constant dense<0.000000e+00> : vector<8x384xf32>
      %32 = tpu.matmul %27, %31, %cst_32 {dimension_numbers = #tpu.dot_dimension_numbers<[1], [0], [0], [1], [0, 0, 1, 1], [], []>} : vector<8x128xf32>, vector<128x384xf32>, vector<8x384xf32> -> vector<8x384xf32>
      %33 = vector.extract_strided_slice %30 {offsets = [0, 0], sizes = [8, 128], strides = [1, 1]} : vector<8x384xf32> to vector<8x128xf32>
      %34 = vector.extract_strided_slice %32 {offsets = [0, 0], sizes = [8, 128], strides = [1, 1]} : vector<8x384xf32> to vector<8x128xf32>
      %35 = arith.addf %33, %34 : vector<8x128xf32>
      %36 = arith.negf %35 : vector<8x128xf32>
      %37 = math.exp %36 : vector<8x128xf32>
      %cst_33 = arith.constant 1.000000e+00 : f32
      %38 = vector.broadcast %cst_33 : f32 to vector<8x128xf32>
      %39 = arith.addf %38, %37 : vector<8x128xf32>
      %40 = arith.divf %38, %39 : vector<8x128xf32>
      %41 = vector.extract_strided_slice %30 {offsets = [0, 128], sizes = [8, 128], strides = [1, 1]} : vector<8x384xf32> to vector<8x128xf32>
      %42 = vector.extract_strided_slice %32 {offsets = [0, 128], sizes = [8, 128], strides = [1, 1]} : vector<8x384xf32> to vector<8x128xf32>
      %43 = arith.addf %41, %42 : vector<8x128xf32>
      %44 = arith.negf %43 : vector<8x128xf32>
      %45 = math.exp %44 : vector<8x128xf32>
      %cst_34 = arith.constant 1.000000e+00 : f32
      %46 = vector.broadcast %cst_34 : f32 to vector<8x128xf32>
      %47 = arith.addf %46, %45 : vector<8x128xf32>
      %48 = arith.divf %46, %47 : vector<8x128xf32>
      %49 = vector.extract_strided_slice %30 {offsets = [0, 256], sizes = [8, 128], strides = [1, 1]} : vector<8x384xf32> to vector<8x128xf32>
      %50 = vector.extract_strided_slice %32 {offsets = [0, 256], sizes = [8, 128], strides = [1, 1]} : vector<8x384xf32> to vector<8x128xf32>
      %51 = arith.addf %50, %26 : vector<8x128xf32>
      %52 = arith.mulf %40, %51 : vector<8x128xf32>
      %53 = arith.addf %49, %52 : vector<8x128xf32>
      %54 = math.tanh %53 : vector<8x128xf32>
      %cst_35 = arith.constant 1.000000e+00 : f32
      %55 = vector.broadcast %cst_35 : f32 to vector<8x128xf32>
      %56 = arith.subf %55, %48 : vector<8x128xf32>
      %57 = arith.mulf %56, %54 : vector<8x128xf32>
      %58 = arith.mulf %48, %27 : vector<8x128xf32>
      %59 = arith.addf %57, %58 : vector<8x128xf32>
      %60 = arith.index_cast %c0_i32_27 : i32 to index
      %c0_36 = arith.constant 0 : index
      %c0_37 = arith.constant 0 : index
      %61 = vector.load %arg14[%60, %c0_36, %c0_37] : memref<8x8x128xf32, #tpu.memory_space<vmem>>, vector<1x8x128xf32>
      %62 = vector.shape_cast %61 : vector<1x8x128xf32> to vector<8x128xf32>
      %63 = vector.shape_cast %59 : vector<8x128xf32> to vector<1x8x128xf32>
      tpu.vector_store %arg14[%60, %c0_36, %c0_37], %63 {strides = array<i32>} : memref<8x8x128xf32, #tpu.memory_space<vmem>>, vector<1x8x128xf32>,
      %c1_i32 = arith.constant 1 : i32
      %64 = arith.index_cast %c1_i32 : i32 to index
      %c0_38 = arith.constant 0 : index
      %c0_39 = arith.constant 0 : index
      %65 = vector.load %arg13[%64, %c0_38, %c0_39] : memref<8x8x384xf32, #tpu.memory_space<vmem>>, vector<1x8x384xf32>
      %66 = vector.shape_cast %65 : vector<1x8x384xf32> to vector<8x384xf32>
      %c0_40 = arith.constant 0 : index
      %c0_41 = arith.constant 0 : index
      %67 = vector.load %arg5[%c0_40, %c0_41] : memref<128x384xf32, #tpu.memory_space<vmem>>, vector<128x384xf32>
      %cst_42 = arith.constant dense<0.000000e+00> : vector<8x384xf32>
      %68 = tpu.matmul %59, %67, %cst_42 {dimension_numbers = #tpu.dot_dimension_numbers<[1], [0], [0], [1], [0, 0, 1, 1], [], []>} : vector<8x128xf32>, vector<128x384xf32>, vector<8x384xf32> -> vector<8x384xf32>
      %69 = vector.extract_strided_slice %66 {offsets = [0, 0], sizes = [8, 128], strides = [1, 1]} : vector<8x384xf32> to vector<8x128xf32>
      %70 = vector.extract_strided_slice %68 {offsets = [0, 0], sizes = [8, 128], strides = [1, 1]} : vector<8x384xf32> to vector<8x128xf32>
      %71 = arith.addf %69, %70 : vector<8x128xf32>
      %72 = arith.negf %71 : vector<8x128xf32>
      %73 = math.exp %72 : vector<8x128xf32>
      %cst_43 = arith.constant 1.000000e+00 : f32
      %74 = vector.broadcast %cst_43 : f32 to vector<8x128xf32>
      %75 = arith.addf %74, %73 : vector<8x128xf32>
      %76 = arith.divf %74, %75 : vector<8x128xf32>
      %77 = vector.extract_strided_slice %66 {offsets = [0, 128], sizes = [8, 128], strides = [1, 1]} : vector<8x384xf32> to vector<8x128xf32>
      %78 = vector.extract_strided_slice %68 {offsets = [0, 128], sizes = [8, 128], strides = [1, 1]} : vector<8x384xf32> to vector<8x128xf32>
      %79 = arith.addf %77, %78 : vector<8x128xf32>
      %80 = arith.negf %79 : vector<8x128xf32>
      %81 = math.exp %80 : vector<8x128xf32>
      %cst_44 = arith.constant 1.000000e+00 : f32
      %82 = vector.broadcast %cst_44 : f32 to vector<8x128xf32>
      %83 = arith.addf %82, %81 : vector<8x128xf32>
      %84 = arith.divf %82, %83 : vector<8x128xf32>
      %85 = vector.extract_strided_slice %66 {offsets = [0, 256], sizes = [8, 128], strides = [1, 1]} : vector<8x384xf32> to vector<8x128xf32>
      %86 = vector.extract_strided_slice %68 {offsets = [0, 256], sizes = [8, 128], strides = [1, 1]} : vector<8x384xf32> to vector<8x128xf32>
      %87 = arith.addf %86, %26 : vector<8x128xf32>
      %88 = arith.mulf %76, %87 : vector<8x128xf32>
      %89 = arith.addf %85, %88 : vector<8x128xf32>
      %90 = math.tanh %89 : vector<8x128xf32>
      %cst_45 = arith.constant 1.000000e+00 : f32
      %91 = vector.broadcast %cst_45 : f32 to vector<8x128xf32>
      %92 = arith.subf %91, %84 : vector<8x128xf32>
      %93 = arith.mulf %92, %90 : vector<8x128xf32>
      %94 = arith.mulf %84, %59 : vector<8x128xf32>
      %95 = arith.addf %93, %94 : vector<8x128xf32>
      %96 = arith.index_cast %c1_i32 : i32 to index
      %c0_46 = arith.constant 0 : index
      %c0_47 = arith.constant 0 : index
      %97 = vector.load %arg14[%96, %c0_46, %c0_47] : memref<8x8x128xf32, #tpu.memory_space<vmem>>, vector<1x8x128xf32>
      %98 = vector.shape_cast %97 : vector<1x8x128xf32> to vector<8x128xf32>
      %99 = vector.shape_cast %95 : vector<8x128xf32> to vector<1x8x128xf32>
      tpu.vector_store %arg14[%96, %c0_46, %c0_47], %99 {strides = array<i32>} : memref<8x8x128xf32, #tpu.memory_space<vmem>>, vector<1x8x128xf32>,
      %c2_i32 = arith.constant 2 : i32
      %100 = arith.index_cast %c2_i32 : i32 to index
      %c0_48 = arith.constant 0 : index
      %c0_49 = arith.constant 0 : index
      %101 = vector.load %arg13[%100, %c0_48, %c0_49] : memref<8x8x384xf32, #tpu.memory_space<vmem>>, vector<1x8x384xf32>
      %102 = vector.shape_cast %101 : vector<1x8x384xf32> to vector<8x384xf32>
      %c0_50 = arith.constant 0 : index
      %c0_51 = arith.constant 0 : index
      %103 = vector.load %arg5[%c0_50, %c0_51] : memref<128x384xf32, #tpu.memory_space<vmem>>, vector<128x384xf32>
      %cst_52 = arith.constant dense<0.000000e+00> : vector<8x384xf32>
      %104 = tpu.matmul %95, %103, %cst_52 {dimension_numbers = #tpu.dot_dimension_numbers<[1], [0], [0], [1], [0, 0, 1, 1], [], []>} : vector<8x128xf32>, vector<128x384xf32>, vector<8x384xf32> -> vector<8x384xf32>
      %105 = vector.extract_strided_slice %102 {offsets = [0, 0], sizes = [8, 128], strides = [1, 1]} : vector<8x384xf32> to vector<8x128xf32>
      %106 = vector.extract_strided_slice %104 {offsets = [0, 0], sizes = [8, 128], strides = [1, 1]} : vector<8x384xf32> to vector<8x128xf32>
      %107 = arith.addf %105, %106 : vector<8x128xf32>
      %108 = arith.negf %107 : vector<8x128xf32>
      %109 = math.exp %108 : vector<8x128xf32>
      %cst_53 = arith.constant 1.000000e+00 : f32
      %110 = vector.broadcast %cst_53 : f32 to vector<8x128xf32>
      %111 = arith.addf %110, %109 : vector<8x128xf32>
      %112 = arith.divf %110, %111 : vector<8x128xf32>
      %113 = vector.extract_strided_slice %102 {offsets = [0, 128], sizes = [8, 128], strides = [1, 1]} : vector<8x384xf32> to vector<8x128xf32>
      %114 = vector.extract_strided_slice %104 {offsets = [0, 128], sizes = [8, 128], strides = [1, 1]} : vector<8x384xf32> to vector<8x128xf32>
      %115 = arith.addf %113, %114 : vector<8x128xf32>
      %116 = arith.negf %115 : vector<8x128xf32>
      %117 = math.exp %116 : vector<8x128xf32>
      %cst_54 = arith.constant 1.000000e+00 : f32
      %118 = vector.broadcast %cst_54 : f32 to vector<8x128xf32>
      %119 = arith.addf %118, %117 : vector<8x128xf32>
      %120 = arith.divf %118, %119 : vector<8x128xf32>
      %121 = vector.extract_strided_slice %102 {offsets = [0, 256], sizes = [8, 128], strides = [1, 1]} : vector<8x384xf32> to vector<8x128xf32>
      %122 = vector.extract_strided_slice %104 {offsets = [0, 256], sizes = [8, 128], strides = [1, 1]} : vector<8x384xf32> to vector<8x128xf32>
      %123 = arith.addf %122, %26 : vector<8x128xf32>
      %124 = arith.mulf %112, %123 : vector<8x128xf32>
      %125 = arith.addf %121, %124 : vector<8x128xf32>
      %126 = math.tanh %125 : vector<8x128xf32>
      %cst_55 = arith.constant 1.000000e+00 : f32
      %127 = vector.broadcast %cst_55 : f32 to vector<8x128xf32>
      %128 = arith.subf %127, %120 : vector<8x128xf32>
      %129 = arith.mulf %128, %126 : vector<8x128xf32>
      %130 = arith.mulf %120, %95 : vector<8x128xf32>
      %131 = arith.addf %129, %130 : vector<8x128xf32>
      %132 = arith.index_cast %c2_i32 : i32 to index
      %c0_56 = arith.constant 0 : index
      %c0_57 = arith.constant 0 : index
      %133 = vector.load %arg14[%132, %c0_56, %c0_57] : memref<8x8x128xf32, #tpu.memory_space<vmem>>, vector<1x8x128xf32>
      %134 = vector.shape_cast %133 : vector<1x8x128xf32> to vector<8x128xf32>
      %135 = vector.shape_cast %131 : vector<8x128xf32> to vector<1x8x128xf32>
      tpu.vector_store %arg14[%132, %c0_56, %c0_57], %135 {strides = array<i32>} : memref<8x8x128xf32, #tpu.memory_space<vmem>>, vector<1x8x128xf32>,
      %c3_i32 = arith.constant 3 : i32
      %136 = arith.index_cast %c3_i32 : i32 to index
      %c0_58 = arith.constant 0 : index
      %c0_59 = arith.constant 0 : index
      %137 = vector.load %arg13[%136, %c0_58, %c0_59] : memref<8x8x384xf32, #tpu.memory_space<vmem>>, vector<1x8x384xf32>
      %138 = vector.shape_cast %137 : vector<1x8x384xf32> to vector<8x384xf32>
      %c0_60 = arith.constant 0 : index
      %c0_61 = arith.constant 0 : index
      %139 = vector.load %arg5[%c0_60, %c0_61] : memref<128x384xf32, #tpu.memory_space<vmem>>, vector<128x384xf32>
      %cst_62 = arith.constant dense<0.000000e+00> : vector<8x384xf32>
      %140 = tpu.matmul %131, %139, %cst_62 {dimension_numbers = #tpu.dot_dimension_numbers<[1], [0], [0], [1], [0, 0, 1, 1], [], []>} : vector<8x128xf32>, vector<128x384xf32>, vector<8x384xf32> -> vector<8x384xf32>
      %141 = vector.extract_strided_slice %138 {offsets = [0, 0], sizes = [8, 128], strides = [1, 1]} : vector<8x384xf32> to vector<8x128xf32>
      %142 = vector.extract_strided_slice %140 {offsets = [0, 0], sizes = [8, 128], strides = [1, 1]} : vector<8x384xf32> to vector<8x128xf32>
      %143 = arith.addf %141, %142 : vector<8x128xf32>
      %144 = arith.negf %143 : vector<8x128xf32>
      %145 = math.exp %144 : vector<8x128xf32>
      %cst_63 = arith.constant 1.000000e+00 : f32
      %146 = vector.broadcast %cst_63 : f32 to vector<8x128xf32>
      %147 = arith.addf %146, %145 : vector<8x128xf32>
      %148 = arith.divf %146, %147 : vector<8x128xf32>
      %149 = vector.extract_strided_slice %138 {offsets = [0, 128], sizes = [8, 128], strides = [1, 1]} : vector<8x384xf32> to vector<8x128xf32>
      %150 = vector.extract_strided_slice %140 {offsets = [0, 128], sizes = [8, 128], strides = [1, 1]} : vector<8x384xf32> to vector<8x128xf32>
      %151 = arith.addf %149, %150 : vector<8x128xf32>
      %152 = arith.negf %151 : vector<8x128xf32>
      %153 = math.exp %152 : vector<8x128xf32>
      %cst_64 = arith.constant 1.000000e+00 : f32
      %154 = vector.broadcast %cst_64 : f32 to vector<8x128xf32>
      %155 = arith.addf %154, %153 : vector<8x128xf32>
      %156 = arith.divf %154, %155 : vector<8x128xf32>
      %157 = vector.extract_strided_slice %138 {offsets = [0, 256], sizes = [8, 128], strides = [1, 1]} : vector<8x384xf32> to vector<8x128xf32>
      %158 = vector.extract_strided_slice %140 {offsets = [0, 256], sizes = [8, 128], strides = [1, 1]} : vector<8x384xf32> to vector<8x128xf32>
      %159 = arith.addf %158, %26 : vector<8x128xf32>
      %160 = arith.mulf %148, %159 : vector<8x128xf32>
      %161 = arith.addf %157, %160 : vector<8x128xf32>
      %162 = math.tanh %161 : vector<8x128xf32>
      %cst_65 = arith.constant 1.000000e+00 : f32
      %163 = vector.broadcast %cst_65 : f32 to vector<8x128xf32>
      %164 = arith.subf %163, %156 : vector<8x128xf32>
      %165 = arith.mulf %164, %162 : vector<8x128xf32>
      %166 = arith.mulf %156, %131 : vector<8x128xf32>
      %167 = arith.addf %165, %166 : vector<8x128xf32>
      %168 = arith.index_cast %c3_i32 : i32 to index
      %c0_66 = arith.constant 0 : index
      %c0_67 = arith.constant 0 : index
      %169 = vector.load %arg14[%168, %c0_66, %c0_67] : memref<8x8x128xf32, #tpu.memory_space<vmem>>, vector<1x8x128xf32>
      %170 = vector.shape_cast %169 : vector<1x8x128xf32> to vector<8x128xf32>
      %171 = vector.shape_cast %167 : vector<8x128xf32> to vector<1x8x128xf32>
      tpu.vector_store %arg14[%168, %c0_66, %c0_67], %171 {strides = array<i32>} : memref<8x8x128xf32, #tpu.memory_space<vmem>>, vector<1x8x128xf32>,
      %c4_i32 = arith.constant 4 : i32
      %172 = arith.index_cast %c4_i32 : i32 to index
      %c0_68 = arith.constant 0 : index
      %c0_69 = arith.constant 0 : index
      %173 = vector.load %arg13[%172, %c0_68, %c0_69] : memref<8x8x384xf32, #tpu.memory_space<vmem>>, vector<1x8x384xf32>
      %174 = vector.shape_cast %173 : vector<1x8x384xf32> to vector<8x384xf32>
      %c0_70 = arith.constant 0 : index
      %c0_71 = arith.constant 0 : index
      %175 = vector.load %arg5[%c0_70, %c0_71] : memref<128x384xf32, #tpu.memory_space<vmem>>, vector<128x384xf32>
      %cst_72 = arith.constant dense<0.000000e+00> : vector<8x384xf32>
      %176 = tpu.matmul %167, %175, %cst_72 {dimension_numbers = #tpu.dot_dimension_numbers<[1], [0], [0], [1], [0, 0, 1, 1], [], []>} : vector<8x128xf32>, vector<128x384xf32>, vector<8x384xf32> -> vector<8x384xf32>
      %177 = vector.extract_strided_slice %174 {offsets = [0, 0], sizes = [8, 128], strides = [1, 1]} : vector<8x384xf32> to vector<8x128xf32>
      %178 = vector.extract_strided_slice %176 {offsets = [0, 0], sizes = [8, 128], strides = [1, 1]} : vector<8x384xf32> to vector<8x128xf32>
      %179 = arith.addf %177, %178 : vector<8x128xf32>
      %180 = arith.negf %179 : vector<8x128xf32>
      %181 = math.exp %180 : vector<8x128xf32>
      %cst_73 = arith.constant 1.000000e+00 : f32
      %182 = vector.broadcast %cst_73 : f32 to vector<8x128xf32>
      %183 = arith.addf %182, %181 : vector<8x128xf32>
      %184 = arith.divf %182, %183 : vector<8x128xf32>
      %185 = vector.extract_strided_slice %174 {offsets = [0, 128], sizes = [8, 128], strides = [1, 1]} : vector<8x384xf32> to vector<8x128xf32>
      %186 = vector.extract_strided_slice %176 {offsets = [0, 128], sizes = [8, 128], strides = [1, 1]} : vector<8x384xf32> to vector<8x128xf32>
      %187 = arith.addf %185, %186 : vector<8x128xf32>
      %188 = arith.negf %187 : vector<8x128xf32>
      %189 = math.exp %188 : vector<8x128xf32>
      %cst_74 = arith.constant 1.000000e+00 : f32
      %190 = vector.broadcast %cst_74 : f32 to vector<8x128xf32>
      %191 = arith.addf %190, %189 : vector<8x128xf32>
      %192 = arith.divf %190, %191 : vector<8x128xf32>
      %193 = vector.extract_strided_slice %174 {offsets = [0, 256], sizes = [8, 128], strides = [1, 1]} : vector<8x384xf32> to vector<8x128xf32>
      %194 = vector.extract_strided_slice %176 {offsets = [0, 256], sizes = [8, 128], strides = [1, 1]} : vector<8x384xf32> to vector<8x128xf32>
      %195 = arith.addf %194, %26 : vector<8x128xf32>
      %196 = arith.mulf %184, %195 : vector<8x128xf32>
      %197 = arith.addf %193, %196 : vector<8x128xf32>
      %198 = math.tanh %197 : vector<8x128xf32>
      %cst_75 = arith.constant 1.000000e+00 : f32
      %199 = vector.broadcast %cst_75 : f32 to vector<8x128xf32>
      %200 = arith.subf %199, %192 : vector<8x128xf32>
      %201 = arith.mulf %200, %198 : vector<8x128xf32>
      %202 = arith.mulf %192, %167 : vector<8x128xf32>
      %203 = arith.addf %201, %202 : vector<8x128xf32>
      %204 = arith.index_cast %c4_i32 : i32 to index
      %c0_76 = arith.constant 0 : index
      %c0_77 = arith.constant 0 : index
      %205 = vector.load %arg14[%204, %c0_76, %c0_77] : memref<8x8x128xf32, #tpu.memory_space<vmem>>, vector<1x8x128xf32>
      %206 = vector.shape_cast %205 : vector<1x8x128xf32> to vector<8x128xf32>
      %207 = vector.shape_cast %203 : vector<8x128xf32> to vector<1x8x128xf32>
      tpu.vector_store %arg14[%204, %c0_76, %c0_77], %207 {strides = array<i32>} : memref<8x8x128xf32, #tpu.memory_space<vmem>>, vector<1x8x128xf32>,
      %c5_i32 = arith.constant 5 : i32
      %208 = arith.index_cast %c5_i32 : i32 to index
      %c0_78 = arith.constant 0 : index
      %c0_79 = arith.constant 0 : index
      %209 = vector.load %arg13[%208, %c0_78, %c0_79] : memref<8x8x384xf32, #tpu.memory_space<vmem>>, vector<1x8x384xf32>
      %210 = vector.shape_cast %209 : vector<1x8x384xf32> to vector<8x384xf32>
      %c0_80 = arith.constant 0 : index
      %c0_81 = arith.constant 0 : index
      %211 = vector.load %arg5[%c0_80, %c0_81] : memref<128x384xf32, #tpu.memory_space<vmem>>, vector<128x384xf32>
      %cst_82 = arith.constant dense<0.000000e+00> : vector<8x384xf32>
      %212 = tpu.matmul %203, %211, %cst_82 {dimension_numbers = #tpu.dot_dimension_numbers<[1], [0], [0], [1], [0, 0, 1, 1], [], []>} : vector<8x128xf32>, vector<128x384xf32>, vector<8x384xf32> -> vector<8x384xf32>
      %213 = vector.extract_strided_slice %210 {offsets = [0, 0], sizes = [8, 128], strides = [1, 1]} : vector<8x384xf32> to vector<8x128xf32>
      %214 = vector.extract_strided_slice %212 {offsets = [0, 0], sizes = [8, 128], strides = [1, 1]} : vector<8x384xf32> to vector<8x128xf32>
      %215 = arith.addf %213, %214 : vector<8x128xf32>
      %216 = arith.negf %215 : vector<8x128xf32>
      %217 = math.exp %216 : vector<8x128xf32>
      %cst_83 = arith.constant 1.000000e+00 : f32
      %218 = vector.broadcast %cst_83 : f32 to vector<8x128xf32>
      %219 = arith.addf %218, %217 : vector<8x128xf32>
      %220 = arith.divf %218, %219 : vector<8x128xf32>
      %221 = vector.extract_strided_slice %210 {offsets = [0, 128], sizes = [8, 128], strides = [1, 1]} : vector<8x384xf32> to vector<8x128xf32>
      %222 = vector.extract_strided_slice %212 {offsets = [0, 128], sizes = [8, 128], strides = [1, 1]} : vector<8x384xf32> to vector<8x128xf32>
      %223 = arith.addf %221, %222 : vector<8x128xf32>
      %224 = arith.negf %223 : vector<8x128xf32>
      %225 = math.exp %224 : vector<8x128xf32>
      %cst_84 = arith.constant 1.000000e+00 : f32
      %226 = vector.broadcast %cst_84 : f32 to vector<8x128xf32>
      %227 = arith.addf %226, %225 : vector<8x128xf32>
      %228 = arith.divf %226, %227 : vector<8x128xf32>
      %229 = vector.extract_strided_slice %210 {offsets = [0, 256], sizes = [8, 128], strides = [1, 1]} : vector<8x384xf32> to vector<8x128xf32>
      %230 = vector.extract_strided_slice %212 {offsets = [0, 256], sizes = [8, 128], strides = [1, 1]} : vector<8x384xf32> to vector<8x128xf32>
      %231 = arith.addf %230, %26 : vector<8x128xf32>
      %232 = arith.mulf %220, %231 : vector<8x128xf32>
      %233 = arith.addf %229, %232 : vector<8x128xf32>
      %234 = math.tanh %233 : vector<8x128xf32>
      %cst_85 = arith.constant 1.000000e+00 : f32
      %235 = vector.broadcast %cst_85 : f32 to vector<8x128xf32>
      %236 = arith.subf %235, %228 : vector<8x128xf32>
      %237 = arith.mulf %236, %234 : vector<8x128xf32>
      %238 = arith.mulf %228, %203 : vector<8x128xf32>
      %239 = arith.addf %237, %238 : vector<8x128xf32>
      %240 = arith.index_cast %c5_i32 : i32 to index
      %c0_86 = arith.constant 0 : index
      %c0_87 = arith.constant 0 : index
      %241 = vector.load %arg14[%240, %c0_86, %c0_87] : memref<8x8x128xf32, #tpu.memory_space<vmem>>, vector<1x8x128xf32>
      %242 = vector.shape_cast %241 : vector<1x8x128xf32> to vector<8x128xf32>
      %243 = vector.shape_cast %239 : vector<8x128xf32> to vector<1x8x128xf32>
      tpu.vector_store %arg14[%240, %c0_86, %c0_87], %243 {strides = array<i32>} : memref<8x8x128xf32, #tpu.memory_space<vmem>>, vector<1x8x128xf32>,
      %c6_i32 = arith.constant 6 : i32
      %244 = arith.index_cast %c6_i32 : i32 to index
      %c0_88 = arith.constant 0 : index
      %c0_89 = arith.constant 0 : index
      %245 = vector.load %arg13[%244, %c0_88, %c0_89] : memref<8x8x384xf32, #tpu.memory_space<vmem>>, vector<1x8x384xf32>
      %246 = vector.shape_cast %245 : vector<1x8x384xf32> to vector<8x384xf32>
      %c0_90 = arith.constant 0 : index
      %c0_91 = arith.constant 0 : index
      %247 = vector.load %arg5[%c0_90, %c0_91] : memref<128x384xf32, #tpu.memory_space<vmem>>, vector<128x384xf32>
      %cst_92 = arith.constant dense<0.000000e+00> : vector<8x384xf32>
      %248 = tpu.matmul %239, %247, %cst_92 {dimension_numbers = #tpu.dot_dimension_numbers<[1], [0], [0], [1], [0, 0, 1, 1], [], []>} : vector<8x128xf32>, vector<128x384xf32>, vector<8x384xf32> -> vector<8x384xf32>
      %249 = vector.extract_strided_slice %246 {offsets = [0, 0], sizes = [8, 128], strides = [1, 1]} : vector<8x384xf32> to vector<8x128xf32>
      %250 = vector.extract_strided_slice %248 {offsets = [0, 0], sizes = [8, 128], strides = [1, 1]} : vector<8x384xf32> to vector<8x128xf32>
      %251 = arith.addf %249, %250 : vector<8x128xf32>
      %252 = arith.negf %251 : vector<8x128xf32>
      %253 = math.exp %252 : vector<8x128xf32>
      %cst_93 = arith.constant 1.000000e+00 : f32
      %254 = vector.broadcast %cst_93 : f32 to vector<8x128xf32>
      %255 = arith.addf %254, %253 : vector<8x128xf32>
      %256 = arith.divf %254, %255 : vector<8x128xf32>
      %257 = vector.extract_strided_slice %246 {offsets = [0, 128], sizes = [8, 128], strides = [1, 1]} : vector<8x384xf32> to vector<8x128xf32>
      %258 = vector.extract_strided_slice %248 {offsets = [0, 128], sizes = [8, 128], strides = [1, 1]} : vector<8x384xf32> to vector<8x128xf32>
      %259 = arith.addf %257, %258 : vector<8x128xf32>
      %260 = arith.negf %259 : vector<8x128xf32>
      %261 = math.exp %260 : vector<8x128xf32>
      %cst_94 = arith.constant 1.000000e+00 : f32
      %262 = vector.broadcast %cst_94 : f32 to vector<8x128xf32>
      %263 = arith.addf %262, %261 : vector<8x128xf32>
      %264 = arith.divf %262, %263 : vector<8x128xf32>
      %265 = vector.extract_strided_slice %246 {offsets = [0, 256], sizes = [8, 128], strides = [1, 1]} : vector<8x384xf32> to vector<8x128xf32>
      %266 = vector.extract_strided_slice %248 {offsets = [0, 256], sizes = [8, 128], strides = [1, 1]} : vector<8x384xf32> to vector<8x128xf32>
      %267 = arith.addf %266, %26 : vector<8x128xf32>
      %268 = arith.mulf %256, %267 : vector<8x128xf32>
      %269 = arith.addf %265, %268 : vector<8x128xf32>
      %270 = math.tanh %269 : vector<8x128xf32>
      %cst_95 = arith.constant 1.000000e+00 : f32
      %271 = vector.broadcast %cst_95 : f32 to vector<8x128xf32>
      %272 = arith.subf %271, %264 : vector<8x128xf32>
      %273 = arith.mulf %272, %270 : vector<8x128xf32>
      %274 = arith.mulf %264, %239 : vector<8x128xf32>
      %275 = arith.addf %273, %274 : vector<8x128xf32>
      %276 = arith.index_cast %c6_i32 : i32 to index
      %c0_96 = arith.constant 0 : index
      %c0_97 = arith.constant 0 : index
      %277 = vector.load %arg14[%276, %c0_96, %c0_97] : memref<8x8x128xf32, #tpu.memory_space<vmem>>, vector<1x8x128xf32>
      %278 = vector.shape_cast %277 : vector<1x8x128xf32> to vector<8x128xf32>
      %279 = vector.shape_cast %275 : vector<8x128xf32> to vector<1x8x128xf32>
      tpu.vector_store %arg14[%276, %c0_96, %c0_97], %279 {strides = array<i32>} : memref<8x8x128xf32, #tpu.memory_space<vmem>>, vector<1x8x128xf32>,
      %c7_i32 = arith.constant 7 : i32
      %280 = arith.index_cast %c7_i32 : i32 to index
      %c0_98 = arith.constant 0 : index
      %c0_99 = arith.constant 0 : index
      %281 = vector.load %arg13[%280, %c0_98, %c0_99] : memref<8x8x384xf32, #tpu.memory_space<vmem>>, vector<1x8x384xf32>
      %282 = vector.shape_cast %281 : vector<1x8x384xf32> to vector<8x384xf32>
      %c0_100 = arith.constant 0 : index
      %c0_101 = arith.constant 0 : index
      %283 = vector.load %arg5[%c0_100, %c0_101] : memref<128x384xf32, #tpu.memory_space<vmem>>, vector<128x384xf32>
      %cst_102 = arith.constant dense<0.000000e+00> : vector<8x384xf32>
      %284 = tpu.matmul %275, %283, %cst_102 {dimension_numbers = #tpu.dot_dimension_numbers<[1], [0], [0], [1], [0, 0, 1, 1], [], []>} : vector<8x128xf32>, vector<128x384xf32>, vector<8x384xf32> -> vector<8x384xf32>
      %285 = vector.extract_strided_slice %282 {offsets = [0, 0], sizes = [8, 128], strides = [1, 1]} : vector<8x384xf32> to vector<8x128xf32>
      %286 = vector.extract_strided_slice %284 {offsets = [0, 0], sizes = [8, 128], strides = [1, 1]} : vector<8x384xf32> to vector<8x128xf32>
      %287 = arith.addf %285, %286 : vector<8x128xf32>
      %288 = arith.negf %287 : vector<8x128xf32>
      %289 = math.exp %288 : vector<8x128xf32>
      %cst_103 = arith.constant 1.000000e+00 : f32
      %290 = vector.broadcast %cst_103 : f32 to vector<8x128xf32>
      %291 = arith.addf %290, %289 : vector<8x128xf32>
      %292 = arith.divf %290, %291 : vector<8x128xf32>
      %293 = vector.extract_strided_slice %282 {offsets = [0, 128], sizes = [8, 128], strides = [1, 1]} : vector<8x384xf32> to vector<8x128xf32>
      %294 = vector.extract_strided_slice %284 {offsets = [0, 128], sizes = [8, 128], strides = [1, 1]} : vector<8x384xf32> to vector<8x128xf32>
      %295 = arith.addf %293, %294 : vector<8x128xf32>
      %296 = arith.negf %295 : vector<8x128xf32>
      %297 = math.exp %296 : vector<8x128xf32>
      %cst_104 = arith.constant 1.000000e+00 : f32
      %298 = vector.broadcast %cst_104 : f32 to vector<8x128xf32>
      %299 = arith.addf %298, %297 : vector<8x128xf32>
      %300 = arith.divf %298, %299 : vector<8x128xf32>
      %301 = vector.extract_strided_slice %282 {offsets = [0, 256], sizes = [8, 128], strides = [1, 1]} : vector<8x384xf32> to vector<8x128xf32>
      %302 = vector.extract_strided_slice %284 {offsets = [0, 256], sizes = [8, 128], strides = [1, 1]} : vector<8x384xf32> to vector<8x128xf32>
      %303 = arith.addf %302, %26 : vector<8x128xf32>
      %304 = arith.mulf %292, %303 : vector<8x128xf32>
      %305 = arith.addf %301, %304 : vector<8x128xf32>
      %306 = math.tanh %305 : vector<8x128xf32>
      %cst_105 = arith.constant 1.000000e+00 : f32
      %307 = vector.broadcast %cst_105 : f32 to vector<8x128xf32>
      %308 = arith.subf %307, %300 : vector<8x128xf32>
      %309 = arith.mulf %308, %306 : vector<8x128xf32>
      %310 = arith.mulf %300, %275 : vector<8x128xf32>
      %311 = arith.addf %309, %310 : vector<8x128xf32>
      %312 = arith.index_cast %c7_i32 : i32 to index
      %c0_106 = arith.constant 0 : index
      %c0_107 = arith.constant 0 : index
      %313 = vector.load %arg14[%312, %c0_106, %c0_107] : memref<8x8x128xf32, #tpu.memory_space<vmem>>, vector<1x8x128xf32>
      %314 = vector.shape_cast %313 : vector<1x8x128xf32> to vector<8x128xf32>
      %315 = vector.shape_cast %311 : vector<8x128xf32> to vector<1x8x128xf32>
      tpu.vector_store %arg14[%312, %c0_106, %c0_107], %315 {strides = array<i32>} : memref<8x8x128xf32, #tpu.memory_space<vmem>>, vector<1x8x128xf32>,
      %c8_i32 = arith.constant 8 : i32
      %c0_108 = arith.constant 0 : index
      %c0_109 = arith.constant 0 : index
      %316 = vector.load %arg12[%c0_108, %c0_109] : memref<8x128xf32, #tpu.memory_space<vmem>>, vector<8x128xf32>
      tpu.vector_store %arg12[%c0_108, %c0_109], %311 {strides = array<i32>} : memref<8x128xf32, #tpu.memory_space<vmem>>, vector<8x128xf32>,
    } else {
    }
    %c0 = arith.constant 0 : index
    %c0_1 = arith.constant 0 : index
    %c0_2 = arith.constant 0 : index
    %3 = vector.load %arg14[%c0, %c0_1, %c0_2] : memref<8x8x128xf32, #tpu.memory_space<vmem>>, vector<8x8x128xf32>
    %4 = vector.shape_cast %3 : vector<8x8x128xf32> to vector<64x128xf32>
    %c0_3 = arith.constant 0 : index
    %c0_4 = arith.constant 0 : index
    %5 = vector.load %arg9[%c0_3, %c0_4] : memref<128x128xf32, #tpu.memory_space<vmem>>, vector<128x128xf32>
    %cst = arith.constant dense<0.000000e+00> : vector<64x128xf32>
    %6 = tpu.matmul %4, %5, %cst {dimension_numbers = #tpu.dot_dimension_numbers<[1], [0], [0], [1], [0, 0, 1, 1], [], []>} : vector<64x128xf32>, vector<128x128xf32>, vector<64x128xf32> -> vector<64x128xf32>
    %c0_5 = arith.constant 0 : index
    %c0_6 = arith.constant 0 : index
    %7 = vector.load %arg10[%c0_5, %c0_6] : memref<1x128xf32, #tpu.memory_space<vmem>>, vector<1x128xf32>
    %8 = vector.broadcast %7 : vector<1x128xf32> to vector<64x128xf32>
    %9 = arith.addf %6, %8 : vector<64x128xf32>
    %10 = vector.shape_cast %9 : vector<64x128xf32> to vector<8x8x128xf32>
    %c0_7 = arith.constant 0 : index
    %c0_8 = arith.constant 0 : index
    %c0_9 = arith.constant 0 : index
    %11 = vector.load %arg11[%c0_7, %c0_8, %c0_9] : memref<8x8x128xf32, #tpu.memory_space<vmem>>, vector<8x8x128xf32>
    tpu.vector_store %arg11[%c0_7, %c0_8, %c0_9], %10 {strides = array<i32>} : memref<8x8x128xf32, #tpu.memory_space<vmem>>, vector<8x8x128xf32>,
    return
  }
  func.func @transform_0(%arg0: i32, %arg1: i32, %arg2: i32) -> (i32, i32, i32) {
    %c0_i32 = arith.constant 0 : i32
    %c0_i32_0 = arith.constant 0 : i32
    return %arg1, %arg0, %c0_i32 : i32, i32, i32
  }
  func.func @transform_1(%arg0: i32, %arg1: i32, %arg2: i32) -> (i32, i32) {
    %c0_i32 = arith.constant 0 : i32
    %c0_i32_0 = arith.constant 0 : i32
    %c0_i32_1 = arith.constant 0 : i32
    return %c0_i32, %c0_i32_0 : i32, i32
  }
  func.func @transform_2(%arg0: i32, %arg1: i32, %arg2: i32) -> (i32, i32) {
    %c0_i32 = arith.constant 0 : i32
    %c0_i32_0 = arith.constant 0 : i32
    %c0_i32_1 = arith.constant 0 : i32
    return %c0_i32, %c0_i32_0 : i32, i32
  }
  func.func @transform_3(%arg0: i32, %arg1: i32, %arg2: i32) -> (i32, i32) {
    %c0_i32 = arith.constant 0 : i32
    %c0_i32_0 = arith.constant 0 : i32
    %c0_i32_1 = arith.constant 0 : i32
    return %c0_i32, %c0_i32_0 : i32, i32
  }
  func.func @transform_4(%arg0: i32, %arg1: i32, %arg2: i32) -> (i32, i32) {
    %c0_i32 = arith.constant 0 : i32
    %c0_i32_0 = arith.constant 0 : i32
    %c0_i32_1 = arith.constant 0 : i32
    return %c0_i32, %c0_i32_0 : i32, i32
  }
  func.func @transform_5(%arg0: i32, %arg1: i32, %arg2: i32) -> (i32, i32) {
    %c0_i32 = arith.constant 0 : i32
    %c0_i32_0 = arith.constant 0 : i32
    return %arg0, %c0_i32 : i32, i32
  }
  func.func @transform_6(%arg0: i32, %arg1: i32, %arg2: i32) -> (i32, i32) {
    %c0_i32 = arith.constant 0 : i32
    %c0_i32_0 = arith.constant 0 : i32
    return %c0_i32, %arg2 : i32, i32
  }
  func.func @transform_7(%arg0: i32, %arg1: i32, %arg2: i32) -> (i32, i32) {
    %c0_i32 = arith.constant 0 : i32
    %c0_i32_0 = arith.constant 0 : i32
    return %c0_i32, %arg2 : i32, i32
  }
  func.func @transform_8(%arg0: i32, %arg1: i32, %arg2: i32) -> (i32, i32, i32) {
    %c0_i32 = arith.constant 0 : i32
    return %arg1, %arg0, %arg2 : i32, i32, i32
  }
  func.func @transform_9(%arg0: i32, %arg1: i32, %arg2: i32) -> (i32, i32) {
    %c0_i32 = arith.constant 0 : i32
    %c0_i32_0 = arith.constant 0 : i32
    return %arg0, %c0_i32 : i32, i32
  }
}

</mosaic_0001>

<bundles_post_ra>
// kernel: tpu_custom_call.1
= control target key start
LH: loop header
LB: loop body
LE: loop exit
PB: predicated region body
PF: predicated region fallthrough
CT: control target
= control target key end

     0   :  { %15 = vsyncpa [#allocation5], 0  ;;  %s4111_s0 = inlined_call_operand.hbm [shape: f32[8,8,128], index: 0, kind: input, shape index: {}]   ;;  %s4112_s1 = inlined_call_operand.hbm [shape: f32[128,384], index: 1, kind: input, shape index: {}]   ;;  %s4113_s2 = inlined_call_operand.hbm [shape: f32[128,384], index: 2, kind: input, shape index: {}]   ;;  %s4114_s3 = inlined_call_operand.hbm [shape: f32[1,384], index: 3, kind: input, shape index: {}]   ;;  %s4115_s4 = inlined_call_operand.vmem [shape: f32[1,128], index: 4, kind: input, shape index: {}]   ;;  %s4116_s5 = inlined_call_operand.vmem [shape: f32[8,128], index: 5, kind: input, shape index: {}]   ;;  %s4117_s6 = inlined_call_operand.hbm [shape: f32[128,128], index: 6, kind: input, shape index: {}]   ;;  %s4118_s7 = inlined_call_operand.vmem [shape: f32[1,128], index: 7, kind: input, shape index: {}]   ;;  %s4119_s8 = inlined_call_operand.hbm [shape: f32[8,8,128], index: 8, kind: output, shape index: {0}]   ;;  %s4120_s9 = inlined_call_operand.hbm [shape: f32[8,128], index: 9, kind: output, shape index: {1}]  }
   0x1   :  { %16 = vsyncpa [#allocation8], 0 }
   0x2   :  { %17 = vsyncpa [#allocation11], 0 }
   0x3   :  { %18 = vsyncpa [#allocation6], 0 }
   0x4   :  { %19 = vsyncpa [#allocation15], 0  ;;  %s3158_s30 = smov [#allocation7]  }
   0x5   :  { %s37_s10 = sshll.u32 %s3158_s30, 4  ;;  %s38_s10 = int_to_ptr.vmem [resolvable:$true] %s37_s10 }
   0x6   :  { %s3016_s11 = scalar_lea.vmem %s38_s10, 6144  ;;  %p3021_p1 = scmp.lt.s32.totalorder %s38_s10, %s38_s10 }
   0x7   :  { %p3017_p0 = scmp.ne.s32.totalorder %s38_s10, %s3016_s11  ;;  %p3022_p2 = scmp.lt.s32.totalorder %s3016_s11, %s3016_s11 }
   0x9   :  { %p3023_p3 = por %p3022_p2, %p3021_p1 }
   0xb   :  { %p3024_p4 = pnand %p3023_p3, %p3017_p0 }
   0xd   :  { %3027 = shalt.err (!%p3024_p4)
}
   0xe   :  { %s3159_s12 = smov 384   ;;  %s3160_s13 = smov 24  }
   0xf   :  { %43 = dma.hbm_to_vmem [thread:$0]  %s4112_s1, 6144, %s38_s10, [#allocation8], %s3159_s12, %s3159_s12, %s3160_s13  }
  0x10   :  { %s3161_s16 = smov [#allocation10]   ;;  %s3162_s18 = smov [#allocation4]  }
  0x11   :  { %s62_s17 = sshll.u32 %s3161_s16, 4  ;;  %s25_s19 = sshll.u32 %s3162_s18, 4  ;;  %s63_s17 = int_to_ptr.vmem [resolvable:$true] %s62_s17  ;;  %s26_s19 = int_to_ptr.vmem [resolvable:$true] %s25_s19 }
  0x12   :  { %s3036_s20 = scalar_lea.vmem %s63_s17, 48  ;;  %s3040_s21 = scalar_lea.vmem %s63_s17, 64 }
  0x13   :  { %p3037_p5 = scmp.ne.s32.totalorder %s63_s17, %s3036_s20  ;;  %p3041_p6 = scmp.lt.s32.totalorder %s63_s17, %s63_s17 }
  0x14   :  { %p3042_p7 = scmp.lt.s32.totalorder %s3040_s21, %s3036_s20 }
  0x16   :  { %p3043_p8 = por %p3042_p7, %p3041_p6 }
  0x18   :  { %p3044_p9 = pnand %p3043_p8, %p3037_p5 }
  0x1a   :  { %3047 = shalt.err (!%p3044_p9)
}
  0x1b   :  { %65 = dma.hbm_to_vmem [thread:$0]  %s4114_s3, 48, %s63_s17, [#allocation11]  }
  0x1c   :  { %s3056_s24 = scalar_lea.vmem %s26_s19, 1024  ;;  %p3061_p11 = scmp.lt.s32.totalorder %s26_s19, %s26_s19 }
  0x1d   :  { %p3057_p10 = scmp.ne.s32.totalorder %s26_s19, %s3056_s24  ;;  %p3062_p12 = scmp.lt.s32.totalorder %s3056_s24, %s3056_s24 }
  0x1f   :  { %p3063_p13 = por %p3062_p12, %p3061_p11 }
  0x21   :  { %p3064_p0 = pnand %p3063_p13, %p3057_p10 }
  0x23   :  { %3067 = shalt.err (!%p3064_p0)
}
  0x24   :  { %s3163_s1 = smov 128   ;;  %s3164_s25 = smov 8  }
  0x25   :  { %31 = dma.hbm_to_vmem [thread:$0]  %s4111_s0, 1024, %s26_s19, [#allocation5], %s3163_s1, %s3163_s1, %s3164_s25  }
  0x26   :  { %s3165_s28 = smov [#allocation9]   ;;  %s3166_s3 = smov [#allocation12]  }
  0x27   :  { %s49_s29 = sshll.u32 %s3165_s28, 4  ;;  %s75_s30 = sshll.u32 %s3166_s3, 4  ;;  %s50_s29 = int_to_ptr.vmem [resolvable:$true] %s49_s29  ;;  %s76_s30 = int_to_ptr.vmem [resolvable:$true] %s75_s30 }
  0x28   :  { %s3076_s10 = scalar_lea.vmem %s50_s29, 6144  ;;  %p3081_p2 = scmp.lt.s32.totalorder %s50_s29, %s50_s29 }
  0x29   :  { %p3077_p1 = scmp.ne.s32.totalorder %s50_s29, %s3076_s10  ;;  %p3082_p3 = scmp.lt.s32.totalorder %s3076_s10, %s3076_s10 }
  0x2b   :  { %p3083_p4 = por %p3082_p3, %p3081_p2 }
  0x2d   :  { %p3084_p5 = pnand %p3083_p4, %p3077_p1 }
  0x2f   :  { %3087 = shalt.err (!%p3084_p5)
}
  0x30   :  { %55 = dma.hbm_to_vmem [thread:$0]  %s4113_s2, 6144, %s50_s29, [#allocation8], %s3159_s12, %s3159_s12, %s3160_s13  }
  0x31   :  { %s3096_s0 = scalar_lea.vmem %s76_s30, 2048  ;;  %p3101_p7 = scmp.lt.s32.totalorder %s76_s30, %s76_s30 }
  0x32   :  { %p3097_p6 = scmp.ne.s32.totalorder %s76_s30, %s3096_s0  ;;  %p3102_p8 = scmp.lt.s32.totalorder %s3096_s0, %s3096_s0 }
  0x34   :  { %p3103_p9 = por %p3102_p8, %p3101_p7 }
  0x36   :  { %p3104_p10 = pnand %p3103_p9, %p3097_p6 }
  0x38   :  { %3107 = shalt.err (!%p3104_p10)
}
  0x39   :  { %81 = dma.hbm_to_vmem [thread:$0]  %s4117_s6, 2048, %s76_s30, [#allocation11], %s3163_s1, %s3163_s1, %s3164_s25  }
  0x3a   :  { %3148 = dma.done.wait [#allocation5], 1024  }
  0x3b   :  { %3149 = vsyncadd [#allocation5], 4294966272 }
  0x3c   :  { %3150 = dma.done.wait [#allocation8], 12288  }
  0x3d   :  { %3151 = vsyncadd [#allocation8], 4294955008 }
  0x3e   :  { %3152 = dma.done.wait [#allocation11], 2096  }
  0x3f   :  { %3153 = vsyncadd [#allocation11], 4294965200  ;;  %v4123_v0 = vmov 0.0   ;;  %v157_v1 = vld [vmem:[#allocation7 + $0x170] sm:$0xff]  ;;  %v156_v2 = vld [vmem:[#allocation7 + $0x168] sm:$0xff]  ;;  %vm3168_vm0 = vmmov 0  }
  0x40   :  { %240 = vmatprep.mubr.f32.mxu1 %v4123_v0  ;;  %547 = vmatprep.mubr.f32.mxu0 %v4123_v0  ;;  %v154_v3 = vld [vmem:[#allocation7 + $0x158] sm:$0xff]  ;;  %v3250_v4 = vld [vmem:[#allocation9 + $0x170] sm:$0xff]  ;;  %v3252_v6 = vld [vmem:[#allocation9 + $0x168] sm:$0xff] }
  0x41   :  { %176 = vmatprep.subr.mxu1 %v157_v1  ;;  %v153_v5 = vld [vmem:[#allocation7 + $0x150] sm:$0xff]  ;;  %483 = vmatprep.subr.mxu0 %v3250_v4  ;;  %v151_v7 = vld [vmem:[#allocation7 + $0x140] sm:$0xff]  ;;  %v3255_v8 = vld [vmem:[#allocation9 + $0x158] sm:$0xff] }
  0x42   :  { %177 = vmatpush1.msra.mxu1 %v156_v2  ;;  %484 = vmatpush1.msra.mxu0 %v3252_v6  ;;  %v150_v9 = vld [vmem:[#allocation7 + $0x138] sm:$0xff]  ;;  %v3258_v10 = vld [vmem:[#allocation9 + $0x150] sm:$0xff]  ;;  %v3260_v11 = vld [vmem:[#allocation9 + $0x140] sm:$0xff] }
  0x43   :  { %178 = vmatprep.subr.mxu1 %v154_v3  ;;  %485 = vmatprep.subr.mxu0 %v3255_v8  ;;  %v148_v12 = vld [vmem:[#allocation7 + $0x128] sm:$0xff]  ;;  %v3263_v13 = vld [vmem:[#allocation9 + $0x138] sm:$0xff]  ;;  %v147_v14 = vld [vmem:[#allocation7 + $0x120] sm:$0xff] }
  0x44   :  { %179 = vmatpush1.msra.mxu1 %v153_v5  ;;  %486 = vmatpush1.msra.mxu0 %v3258_v10  ;;  %v3266_v15 = vld [vmem:[#allocation9 + $0x128] sm:$0xff]  ;;  %v145_v16 = vld [vmem:[#allocation7 + $0x110] sm:$0xff]  ;;  %v3269_v17 = vld [vmem:[#allocation9 + $0x120] sm:$0xff] }
  0x45   :  { %180 = vmatprep.subr.mxu1 %v151_v7  ;;  %487 = vmatprep.subr.mxu0 %v3260_v11  ;;  %v144_v18 = vld [vmem:[#allocation7 + $0x108] sm:$0xff]  ;;  %v3272_v19 = vld [vmem:[#allocation9 + $0x110] sm:$0xff]  ;;  %v142_v20 = vld [vmem:[#allocation7 + $0xf8] sm:$0xff] }
  0x46   :  { %181 = vmatpush1.msra.mxu1 %v150_v9  ;;  %488 = vmatpush1.msra.mxu0 %v3263_v13  ;;  %v3275_v21 = vld [vmem:[#allocation9 + $0x108] sm:$0xff]  ;;  %v141_v22 = vld [vmem:[#allocation7 + $0xf0] sm:$0xff]  ;;  %v3278_v23 = vld [vmem:[#allocation9 + $0xf8] sm:$0xff] }
  0x47   :  { %182 = vmatprep.subr.mxu1 %v148_v12  ;;  %489 = vmatprep.subr.mxu0 %v3266_v15  ;;  %v139_v24 = vld [vmem:[#allocation7 + $0xe0] sm:$0xff]  ;;  %v3281_v25 = vld [vmem:[#allocation9 + $0xf0] sm:$0xff]  ;;  %v138_v26 = vld [vmem:[#allocation7 + $0xd8] sm:$0xff] }
  0x48   :  { %183 = vmatpush1.msra.mxu1 %v147_v14  ;;  %490 = vmatpush1.msra.mxu0 %v3269_v17  ;;  %v3284_v27 = vld [vmem:[#allocation9 + $0xe0] sm:$0xff]  ;;  %v136_v28 = vld [vmem:[#allocation7 + $0xc8] sm:$0xff]  ;;  %v3287_v29 = vld [vmem:[#allocation9 + $0xd8] sm:$0xff] }
  0x49   :  { %184 = vmatprep.subr.mxu1 %v145_v16  ;;  %491 = vmatprep.subr.mxu0 %v3272_v19  ;;  %v135_v30 = vld [vmem:[#allocation7 + $0xc0] sm:$0xff]  ;;  %v3290_v31 = vld [vmem:[#allocation9 + $0xc8] sm:$0xff]  ;;  %v133_v32 = vld [vmem:[#allocation7 + $0xb0] sm:$0xff] }
  0x4a   :  { %185 = vmatpush1.msra.mxu1 %v144_v18  ;;  %492 = vmatpush1.msra.mxu0 %v3275_v21  ;;  %v3293_v33 = vld [vmem:[#allocation9 + $0xc0] sm:$0xff]  ;;  %v132_v34 = vld [vmem:[#allocation7 + $0xa8] sm:$0xff]  ;;  %v3296_v35 = vld [vmem:[#allocation9 + $0xb0] sm:$0xff] }
  0x4b   :  { %186 = vmatprep.subr.mxu1 %v142_v20  ;;  %493 = vmatprep.subr.mxu0 %v3278_v23  ;;  %v130_v36 = vld [vmem:[#allocation7 + $0x98] sm:$0xff]  ;;  %v3299_v37 = vld [vmem:[#allocation9 + $0xa8] sm:$0xff]  ;;  %v129_v38 = vld [vmem:[#allocation7 + $0x90] sm:$0xff] }
  0x4c   :  { %187 = vmatpush1.msra.mxu1 %v141_v22  ;;  %494 = vmatpush1.msra.mxu0 %v3281_v25  ;;  %v3302_v39 = vld [vmem:[#allocation9 + $0x98] sm:$0xff]  ;;  %v127_v40 = vld [vmem:[#allocation7 + $0x80] sm:$0xff]  ;;  %v3305_v41 = vld [vmem:[#allocation9 + $0x90] sm:$0xff] }
  0x4d   :  { %188 = vmatprep.subr.mxu1 %v139_v24  ;;  %495 = vmatprep.subr.mxu0 %v3284_v27  ;;  %v126_v42 = vld [vmem:[#allocation7 + $0x78] sm:$0xff]  ;;  %v3308_v43 = vld [vmem:[#allocation9 + $0x80] sm:$0xff]  ;;  %v124_v44 = vld [vmem:[#allocation7 + $0x68] sm:$0xff] }
  0x4e   :  { %189 = vmatpush1.msra.mxu1 %v138_v26  ;;  %496 = vmatpush1.msra.mxu0 %v3287_v29  ;;  %v3311_v45 = vld [vmem:[#allocation9 + $0x78] sm:$0xff]  ;;  %v123_v46 = vld [vmem:[#allocation7 + $0x60] sm:$0xff]  ;;  %v3314_v47 = vld [vmem:[#allocation9 + $0x68] sm:$0xff] }
  0x4f   :  { %190 = vmatprep.subr.mxu1 %v136_v28  ;;  %497 = vmatprep.subr.mxu0 %v3290_v31  ;;  %v121_v48 = vld [vmem:[#allocation7 + $0x50] sm:$0xff]  ;;  %v3317_v49 = vld [vmem:[#allocation9 + $0x60] sm:$0xff]  ;;  %v120_v50 = vld [vmem:[#allocation7 + $0x48] sm:$0xff] }
  0x50   :  { %191 = vmatpush1.msra.mxu1 %v135_v30  ;;  %498 = vmatpush1.msra.mxu0 %v3293_v33  ;;  %v3320_v51 = vld [vmem:[#allocation9 + $0x50] sm:$0xff]  ;;  %v118_v52 = vld [vmem:[#allocation7 + $0x38] sm:$0xff]  ;;  %v3323_v53 = vld [vmem:[#allocation9 + $0x48] sm:$0xff] }
  0x51   :  { %192 = vmatprep.subr.mxu1 %v133_v32  ;;  %499 = vmatprep.subr.mxu0 %v3296_v35  ;;  %v117_v54 = vld [vmem:[#allocation7 + $0x30] sm:$0xff]  ;;  %v3326_v55 = vld [vmem:[#allocation9 + $0x38] sm:$0xff]  ;;  %v115_v56 = vld [vmem:[#allocation7 + $0x20] sm:$0xff] }
  0x52   :  { %193 = vmatpush1.msra.mxu1 %v132_v34  ;;  %500 = vmatpush1.msra.mxu0 %v3299_v37  ;;  %v3329_v57 = vld [vmem:[#allocation9 + $0x30] sm:$0xff]  ;;  %v114_v58 = vld [vmem:[#allocation7 + $0x18] sm:$0xff]  ;;  %v3332_v59 = vld [vmem:[#allocation9 + $0x20] sm:$0xff] }
  0x53   :  { %194 = vmatprep.subr.mxu1 %v130_v36  ;;  %501 = vmatprep.subr.mxu0 %v3302_v39  ;;  %4143 = vst [vmem:[#allocation21_spill] sm:$0xff] %v3332_v59  ;;  %v112_v60 = vld [vmem:[#allocation7 + $0x8] sm:$0xff]  ;;  %v3335_v61 = vld [vmem:[#allocation9 + $0x18] sm:$0xff]  ;;  %v111_v62 = vld [vmem:[#allocation7] sm:$0xff] }
  0x54   :  { %195 = vmatpush1.msra.mxu1 %v129_v38  ;;  %502 = vmatpush1.msra.mxu0 %v3305_v41  ;;  %4144 = vst [vmem:[#allocation22_spill] sm:$0xff] %v3335_v61  ;;  %v3338_v63 = vld [vmem:[#allocation9 + $0x8] sm:$0xff]  ;;  %v3341_v1 = vld [vmem:[#allocation4] sm:$0xff]  ;;  %v158_v2 = vld [vmem:[#allocation7 + $0x178] sm:$0xff] }
  0x55   :  { %196 = vmatprep.subr.mxu1 %v127_v40  ;;  %503 = vmatprep.subr.mxu0 %v3308_v43  ;;  %4145 = vst [vmem:[#allocation23_spill] sm:$0xff] %v3338_v63  ;;  %v3344_v3 = vld [vmem:[#allocation9] sm:$0xff]  ;;  %v3354_v9 = vld [vmem:[#allocation4 + $0x8] sm:$0xff]  ;;  %v149_v14 = vld [vmem:[#allocation7 + $0x130] sm:$0xff] }
  0x56   :  { %197 = vmatpush1.msra.mxu1 %v126_v42  ;;  %504 = vmatpush1.msra.mxu0 %v3311_v45  ;;  %4146 = vst [vmem:[#allocation24_spill] sm:$0xff] %v3344_v3  ;;  %v155_v5 = vld [vmem:[#allocation7 + $0x160] sm:$0xff]  ;;  %v152_v12 = vld [vmem:[#allocation7 + $0x148] sm:$0xff]  ;;  %v3360_v16 = vld [vmem:[#allocation4 + $0x10] sm:$0xff] }
  0x57   :  { %198 = vmatprep.subr.mxu1 %v124_v44  ;;  %505 = vmatprep.subr.mxu0 %v3314_v47  ;;  %v3350_v7 = vld [vmem:[%s4116_s5] sm:$0xff]  ;;  %v146_v18 = vld [vmem:[#allocation7 + $0x118] sm:$0xff]  ;;  %v140_v24 = vld [vmem:[#allocation7 + $0xe8] sm:$0xff] }
  0x58   :  { %199 = vmatpush1.msra.mxu1 %v123_v46  ;;  %506 = vmatpush1.msra.mxu0 %v3317_v49  ;;  %v143_v20 = vld [vmem:[#allocation7 + $0x100] sm:$0xff]  ;;  %v3366_v22 = vld [vmem:[#allocation4 + $0x18] sm:$0xff]  ;;  %v137_v26 = vld [vmem:[#allocation7 + $0xd0] sm:$0xff] }
  0x59   :  { %200 = vmatprep.subr.mxu1 %v121_v48  ;;  %507 = vmatprep.subr.mxu0 %v3320_v51  ;;  %v107_v28 = vld [vmem:[#allocation4 + $0x20] sm:$0xff]  ;;  %v134_v30 = vld [vmem:[#allocation7 + $0xb8] sm:$0xff]  ;;  %v108_v34 = vld [vmem:[#allocation4 + $0x28] sm:$0xff] }
  0x5a   :  { %201 = vmatpush1.msra.mxu1 %v120_v50  ;;  %508 = vmatpush1.msra.mxu0 %v3323_v53  ;;  %v131_v32 = vld [vmem:[#allocation7 + $0xa0] sm:$0xff]  ;;  %v128_v36 = vld [vmem:[#allocation7 + $0x88] sm:$0xff]  ;;  %v125_v38 = vld [vmem:[#allocation7 + $0x70] sm:$0xff] }
  0x5b   :  { %202 = vmatprep.subr.mxu1 %v118_v52  ;;  %509 = vmatprep.subr.mxu0 %v3326_v55  ;;  %v109_v40 = vld [vmem:[#allocation4 + $0x30] sm:$0xff]  ;;  %v122_v42 = vld [vmem:[#allocation7 + $0x58] sm:$0xff]  ;;  %v119_v44 = vld [vmem:[#allocation7 + $0x40] sm:$0xff] }
  0x5c   :  { %203 = vmatpush1.msra.mxu1 %v117_v54  ;;  %510 = vmatpush1.msra.mxu0 %v3329_v57  ;;  %v110_v46 = vld [vmem:[#allocation4 + $0x38] sm:$0xff]  ;;  %v116_v48 = vld [vmem:[#allocation7 + $0x28] sm:$0xff]  ;;  %v113_v50 = vld [vmem:[#allocation7 + $0x10] sm:$0xff] }
  0x5d   :  { %204 = vmatprep.subr.mxu1 %v115_v56  ;;  %511 = vmatprep.subr.mxu0 %v3332_v59  ;;  %v3384_v52 = vld [vmem:[#allocation9 + $0x178] sm:$0xff]  ;;  %v3390_v54 = vld [vmem:[#allocation9 + $0x160] sm:$0xff]  ;;  %v3395_v56 = vld [vmem:[#allocation9 + $0x148] sm:$0xff] }
  0x5e   :  { %205 = vmatpush1.msra.mxu1 %v114_v58  ;;  %512 = vmatpush1.msra.mxu0 %v3335_v61  ;;  %v3401_v58 = vld [vmem:[#allocation9 + $0x130] sm:$0xff] }
  0x5f   :  { %206 = vmatprep.subr.mxu1 %v112_v60  ;;  %513 = vmatprep.subr.mxu0 %v3338_v63  ;;  %v3406_v60 = vld [vmem:[#allocation9 + $0x118] sm:$0xff] }
  0x60   :  { %207 = vmatpush1.msra.mxu1 %v111_v62  ;;  %514 = vmatpush1.msra.mxu0 %v3344_v3  ;;  %v3412_v62 = vld [vmem:[#allocation9 + $0x100] sm:$0xff] }
  0x61   :  { %241 = vmatmul.mubr.f32.vlgmr.msra.gmra.mxu1 %v3341_v1  ;;  %2546 = vmatprep.subr.mxu1 %v158_v2 }
  0x62   :  { %2547 = vmatpush3.msra.mxu1 %v158_v2  ;;  %548 = vmatmul.mubr.f32.vlgmr.msra.gmra.mxu0 %v3350_v7  ;;  %v3422_v2 = vld [vmem:[#allocation9 + $0xd0] sm:$0xff] }
  0x63   :  { %2548 = vmatprep.subr.mxu1 %v155_v5  ;;  %246 = vmatprep.mubr.f32.mxu1 %v4123_v0 }
  0x64   :  { %2549 = vmatpush3.msra.mxu1 %v155_v5  ;;  %699 = vmatprep.subr.mxu0 %v3250_v4  ;;  %v3428_v5 = vld [vmem:[#allocation9 + $0xb8] sm:$0xff] }
  0x65   :  { %247 = vmatmul.mubr.f32.gmra.mxu1 %v3354_v9  ;;  %2550 = vmatprep.subr.mxu1 %v152_v12 }
  0x66   :  { %2551 = vmatpush3.msra.mxu1 %v152_v12  ;;  %252 = vmatprep.mubr.f32.mxu1 %v4123_v0  ;;  %v3440_v12 = vld [vmem:[#allocation9 + $0x88] sm:$0xff] }
  0x67   :  { %2552 = vmatprep.subr.mxu1 %v149_v14  ;;  %700 = vmatpush1.msra.mxu0 %v3252_v6 }
  0x68   :  { %2553 = vmatpush3.msra.mxu1 %v149_v14  ;;  %701 = vmatprep.subr.mxu0 %v3255_v8  ;;  %v3446_v14 = vld [vmem:[#allocation9 + $0x70] sm:$0xff] }
  0x69   :  { %253 = vmatmul.mubr.f32.gmra.mxu1 %v3360_v16  ;;  %2554 = vmatprep.subr.mxu1 %v146_v18 }
  0x6a   :  { %2555 = vmatpush3.msra.mxu1 %v146_v18  ;;  %258 = vmatprep.mubr.f32.mxu1 %v4123_v0  ;;  %v3458_v18 = vld [vmem:[#allocation9 + $0x40] sm:$0xff] }
  0x6b   :  { %2556 = vmatprep.subr.mxu1 %v143_v20  ;;  %702 = vmatpush1.msra.mxu0 %v3258_v10 }
  0x6c   :  { %2557 = vmatpush3.msra.mxu1 %v143_v20  ;;  %703 = vmatprep.subr.mxu0 %v3260_v11  ;;  %v3464_v20 = vld [vmem:[#allocation9 + $0x28] sm:$0xff] }
  0x6d   :  { %259 = vmatmul.mubr.f32.gmra.mxu1 %v3366_v22  ;;  %2558 = vmatprep.subr.mxu1 %v140_v24  ;;  %4147 = vst [vmem:[#allocation25_spill] sm:$0xff] %v3464_v20 }
  0x6e   :  { %2559 = vmatpush3.msra.mxu1 %v140_v24  ;;  %264 = vmatprep.mubr.f32.mxu1 %v4123_v0 }
  0x6f   :  { %2560 = vmatprep.subr.mxu1 %v137_v26  ;;  %704 = vmatpush1.msra.mxu0 %v3263_v13 }
  0x70   :  { %2561 = vmatpush3.msra.mxu1 %v137_v26  ;;  %705 = vmatprep.subr.mxu0 %v3266_v15 }
  0x71   :  { %265 = vmatmul.mubr.f32.gmra.mxu1 %v107_v28  ;;  %2562 = vmatprep.subr.mxu1 %v134_v30 }
  0x72   :  { %2563 = vmatpush3.msra.mxu1 %v134_v30  ;;  %270 = vmatprep.mubr.f32.mxu1 %v4123_v0 }
  0x73   :  { %2564 = vmatprep.subr.mxu1 %v131_v32  ;;  %706 = vmatpush1.msra.mxu0 %v3269_v17 }
  0x74   :  { %2565 = vmatpush3.msra.mxu1 %v131_v32  ;;  %707 = vmatprep.subr.mxu0 %v3272_v19 }
  0x75   :  { %271 = vmatmul.mubr.f32.gmra.mxu1 %v108_v34  ;;  %2566 = vmatprep.subr.mxu1 %v128_v36 }
  0x76   :  { %2567 = vmatpush3.msra.mxu1 %v128_v36  ;;  %276 = vmatprep.mubr.f32.mxu1 %v4123_v0 }
  0x77   :  { %2568 = vmatprep.subr.mxu1 %v125_v38  ;;  %708 = vmatpush1.msra.mxu0 %v3275_v21 }
  0x78   :  { %2569 = vmatpush3.msra.mxu1 %v125_v38  ;;  %709 = vmatprep.subr.mxu0 %v3278_v23 }
  0x79   :  { %277 = vmatmul.mubr.f32.gmra.mxu1 %v109_v40  ;;  %2570 = vmatprep.subr.mxu1 %v122_v42 }
  0x7a   :  { %2571 = vmatpush3.msra.mxu1 %v122_v42  ;;  %282 = vmatprep.mubr.f32.mxu1 %v4123_v0 }
  0x7b   :  { %2572 = vmatprep.subr.mxu1 %v119_v44  ;;  %710 = vmatpush1.msra.mxu0 %v3281_v25 }
  0x7c   :  { %2573 = vmatpush3.msra.mxu1 %v119_v44  ;;  %711 = vmatprep.subr.mxu0 %v3284_v27 }
  0x7d   :  { %283 = vmatmul.mubr.f32.gmra.mxu1 %v110_v46  ;;  %2574 = vmatprep.subr.mxu1 %v116_v48 }
  0x7e   :  { %2575 = vmatpush3.msra.mxu1 %v116_v48  ;;  %2578 = vmatprep.mubr.f32.mxu1 %v3341_v1  ;;  %v3416_v1 = vld [vmem:[#allocation9 + $0xe8] sm:$0xff] }
  0x7f   :  { %2576 = vmatprep.subr.mxu1 %v113_v50  ;;  %712 = vmatpush1.msra.mxu0 %v3287_v29 }
  0x80   :  { %2577 = vmatpush3.msra.mxu1 %v113_v50  ;;  %713 = vmatprep.subr.mxu0 %v3290_v31 }
  0x81   :  { %2579 = vmatmul.mubr.f32.vlgmr.msra.gmra.mxu1 %v3354_v9  ;;  %2590 = vmatprep.subr.mxu1 %v4123_v0  ;;  %v3434_v9 = vld [vmem:[#allocation9 + $0xa0] sm:$0xff] }
  0x82   :  { %2591 = vmatpush3.msra.mxu1 %v3384_v52  ;;  %2581 = vmatprep.mubr.f32.mxu1 %v3360_v16  ;;  %v3452_v16 = vld [vmem:[#allocation9 + $0x58] sm:$0xff] }
  0x83   :  { %2592 = vmatprep.subr.mxu1 %v4123_v0  ;;  %714 = vmatpush1.msra.mxu0 %v3293_v33 }
  0x84   :  { %2593 = vmatpush3.msra.mxu1 %v3390_v54  ;;  %715 = vmatprep.subr.mxu0 %v3296_v35 }
  0x85   :  { %2594 = vmatprep.subr.mxu1 %v4123_v0  ;;  %2582 = vmatmul.mubr.f32.gmra.mxu1 %v3366_v22  ;;  %v3470_v22 = vld [vmem:[#allocation9 + $0x10] sm:$0xff] }
  0x86   :  { %2595 = vmatpush3.msra.mxu1 %v3395_v56  ;;  %2584 = vmatprep.mubr.f32.mxu1 %v107_v28  ;;  %4148 = vst [vmem:[#allocation26_spill] sm:$0xff] %v3470_v22  ;;  %v159_v28 = vld [vmem:[#allocation10] sm:$0x7] }
  0x87   :  { %2596 = vmatprep.subr.mxu1 %v4123_v0  ;;  %716 = vmatpush1.msra.mxu0 %v3299_v37 }
  0x88   :  { %2597 = vmatpush3.msra.mxu1 %v3401_v58  ;;  %717 = vmatprep.subr.mxu0 %v3302_v39 }
  0x89   :  { %2598 = vmatprep.subr.mxu1 %v4123_v0  ;;  %2585 = vmatmul.mubr.f32.gmra.mxu1 %v108_v34 }
  0x8a   :  { %2599 = vmatpush3.msra.mxu1 %v3406_v60  ;;  %2587 = vmatprep.mubr.f32.mxu1 %v109_v40 }
  0x8b   :  { %2600 = vmatprep.subr.mxu1 %v4123_v0  ;;  %718 = vmatpush1.msra.mxu0 %v3305_v41 }
  0x8c   :  { %2601 = vmatpush3.msra.mxu1 %v3412_v62  ;;  %719 = vmatprep.subr.mxu0 %v3308_v43 }
  0x8d   :  { %2602 = vmatprep.subr.mxu1 %v4123_v0  ;;  %2588 = vmatmul.mubr.f32.gmra.mxu1 %v110_v46 }
  0x8e   :  { %2603 = vmatpush3.msra.mxu1 %v3416_v1  ;;  %2622 = vmatprep.mubr.msk.f32.mxu1 %vm3168_vm0, %v4123_v0 }
  0x8f   :  { %2604 = vmatprep.subr.mxu1 %v4123_v0  ;;  %720 = vmatpush1.msra.mxu0 %v3311_v45 }
  0x90   :  { %2605 = vmatpush3.msra.mxu1 %v3422_v2  ;;  %721 = vmatprep.subr.mxu0 %v3314_v47 }
  0x91   :  { %2606 = vmatprep.subr.mxu1 %v4123_v0  ;;  %722 = vmatpush1.msra.mxu0 %v3317_v49 }
  0x92   :  { %2607 = vmatpush3.msra.mxu1 %v3428_v5  ;;  %723 = vmatprep.subr.mxu0 %v3320_v51 }
  0x93   :  { %2608 = vmatprep.subr.mxu1 %v4123_v0  ;;  %724 = vmatpush1.msra.mxu0 %v3323_v53 }
  0x94   :  { %2609 = vmatpush3.msra.mxu1 %v3434_v9  ;;  %725 = vmatprep.subr.mxu0 %v3326_v55 }
  0x95   :  { %2610 = vmatprep.subr.mxu1 %v4123_v0  ;;  %726 = vmatpush1.msra.mxu0 %v3329_v57 }
  0x96   :  { %2611 = vmatpush3.msra.mxu1 %v3440_v12  ;;  %727 = vmatprep.subr.mxu0 %v3332_v59 }
  0x97   :  { %2612 = vmatprep.subr.mxu1 %v4123_v0  ;;  %728 = vmatpush1.msra.mxu0 %v3335_v61 }
  0x98   :  { %2613 = vmatpush3.msra.mxu1 %v3446_v14  ;;  %729 = vmatprep.subr.mxu0 %v3338_v63 }
  0x99   :  { %2614 = vmatprep.subr.mxu1 %v4123_v0  ;;  %730 = vmatpush1.msra.mxu0 %v3344_v3 }
  0x9a   :  { %2615 = vmatpush3.msra.mxu1 %v3452_v16  ;;  %763 = vmatprep.mubr.f32.mxu0 %v4123_v0 }
  0x9b   :  { %2616 = vmatprep.subr.mxu1 %v4123_v0  ;;  %916 = vmatprep.subr.mxu0 %v3250_v4  ;;  %v161_v4 = vlaneseq }
  0x9c   :  { %2617 = vmatpush3.msra.mxu1 %v3458_v18 }
  0x9d   :  { %2618 = vmatprep.subr.mxu1 %v4123_v0  ;;  %v162_v24 = vshrl.u32 %v161_v4, 7 }
  0x9e   :  { %2619 = vmatpush3.msra.mxu1 %v3464_v20 }
  0x9f   :  { %2620 = vmatprep.subr.mxu1 %v4123_v0  ;;  %v163_v26 = vsub.s32 0, %v162_v24  ;;  %v167_v32 = vsub.s32 1, %v162_v24 }
  0xa0   :  { %2621 = vmatpush3.msra.mxu1 %v3470_v22 }
  0xa1   :  { %2623 = vmatmul.mubr.f32.vlgmr.msra.gmra.mxu1 %v3350_v7  ;;  %2625 = vmatprep.subr.mxu1 %v4123_v0  ;;  %v164_v36 = vrot.slane %v159_v28, %v163_v26  ;;  %v168_v40 = vrot.slane %v159_v28, %v167_v32 }
  0xa2   :  { %2626 = vmatpush3.msra.mxu1 %v3384_v52  ;;  %2657 = vmatprep.mubr.msk.f32.mxu1 %vm3168_vm0, %v4123_v0 }
  0xa3   :  { %2627 = vmatprep.subr.mxu1 %v4123_v0 }
  0xa4   :  { %2628 = vmatpush3.msra.mxu1 %v3390_v54 }
  0xa5   :  { %2629 = vmatprep.subr.mxu1 %v4123_v0 }
  0xa6   :  { %2630 = vmatpush3.msra.mxu1 %v3395_v56 }
  0xa7   :  { %2631 = vmatprep.subr.mxu1 %v4123_v0 }
  0xa8   :  { %2632 = vmatpush3.msra.mxu1 %v3401_v58 }
  0xa9   :  { %2633 = vmatprep.subr.mxu1 %v4123_v0 }
  0xaa   :  { %2634 = vmatpush3.msra.mxu1 %v3406_v60 }
  0xab   :  { %2635 = vmatprep.subr.mxu1 %v4123_v0 }
  0xac   :  { %2636 = vmatpush3.msra.mxu1 %v3412_v62 }
  0xad   :  { %2637 = vmatprep.subr.mxu1 %v4123_v0 }
  0xae   :  { %2638 = vmatpush3.msra.mxu1 %v3416_v1 }
  0xaf   :  { %2639 = vmatprep.subr.mxu1 %v4123_v0 }
  0xb0   :  { %2640 = vmatpush3.msra.mxu1 %v3422_v2 }
  0xb1   :  { %2641 = vmatprep.subr.mxu1 %v4123_v0 }
  0xb2   :  { %2642 = vmatpush3.msra.mxu1 %v3428_v5 }
  0xb3   :  { %2643 = vmatprep.subr.mxu1 %v4123_v0 }
  0xb4   :  { %2644 = vmatpush3.msra.mxu1 %v3434_v9 }
  0xb5   :  { %2645 = vmatprep.subr.mxu1 %v4123_v0 }
  0xb6   :  { %2646 = vmatpush3.msra.mxu1 %v3440_v12 }
  0xb7   :  { %2647 = vmatprep.subr.mxu1 %v4123_v0 }
  0xb8   :  { %2648 = vmatpush3.msra.mxu1 %v3446_v14 }
  0xb9   :  { %2649 = vmatprep.subr.mxu1 %v4123_v0 }
  0xba   :  { %2650 = vmatpush3.msra.mxu1 %v3452_v16 }
  0xbb   :  { %2651 = vmatprep.subr.mxu1 %v4123_v0 }
  0xbc   :  { %2652 = vmatpush3.msra.mxu1 %v3458_v18 }
  0xbd   :  { %2653 = vmatprep.subr.mxu1 %v4123_v0 }
  0xbe   :  { %2654 = vmatpush3.msra.mxu1 %v3464_v20 }
  0xbf   :  { %2655 = vmatprep.subr.mxu1 %v4123_v0 }
  0xc0   :  { %2656 = vmatpush3.msra.mxu1 %v3470_v22 }
  0xc1   :  { %2660 = vmatprep.subr.mxu1 %v4123_v0 }
 0x121   :  { %v242_v30 = vpop.f32.mrf.mxu1 }
 0x123   :  { %v244_v34 = vpop.f32.mrf.mxu1 }
 0x125   :  { %v248_v38 = vpop.f32.mrf.mxu1 }
 0x126   :  { %v3511_v42 = vadd.f32 %v248_v38, %v164_v36 }
 0x127   :  { %v250_v44 = vpop.f32.mrf.mxu1 }
 0x128   :  { %4149 = vst [vmem:[#allocation27_spill] sm:$0xff] %v3511_v42  ;;  %v3513_v46 = vadd.f32 %v250_v44, %v168_v40 }
 0x129   :  { %v254_v48 = vpop.f32.mrf.mxu1 }
 0x12a   :  { %4150 = vst [vmem:[#allocation28_spill] sm:$0xff] %v3513_v46  ;;  %v3515_v50 = vadd.f32 %v254_v48, %v164_v36  ;;  %v243_v46 = vadd.f32 %v242_v30, %v164_v36  ;;  %v549_v48 = vpop.f32.mrf.mxu0 }
 0x12b   :  { %v256_v22 = vpop.f32.mrf.mxu1 }
 0x12c   :  { %4151 = vst [vmem:[#allocation29_spill] sm:$0xff] %v3515_v50  ;;  %v3517_v0 = vadd.f32 %v256_v22, %v168_v40 }
 0x12d   :  { %v260_v4 = vpop.f32.mrf.mxu1 }
 0x12e   :  { %4152 = vst [vmem:[#allocation30_spill] sm:$0xff] %v3517_v0  ;;  %v3519_v3 = vadd.f32 %v260_v4, %v164_v36  ;;  %v624_v4 = vadd.f32 %v549_v48, %v243_v46  ;;  %v245_v46 = vadd.f32 %v244_v34, %v168_v40 }
 0x12f   :  { %v262_v63 = vpop.f32.mrf.mxu1 }
 0x130   :  { %4153 = vst [vmem:[#allocation31_spill] sm:$0xff] %v3519_v3  ;;  %v3521_v20 = vadd.f32 %v262_v63, %v168_v40  ;;  %v171_v63 = vsub.s32 2, %v162_v24 }
 0x131   :  { %v266_v26 = vpop.f32.mrf.mxu1 }
 0x132   :  { %4154 = vst [vmem:[#allocation32_spill] sm:$0xff] %v3521_v20  ;;  %v3523_v61 = vadd.f32 %v266_v26, %v164_v36 }
 0x133   :  { %v268_v32 = vpop.f32.mrf.mxu1 }
 0x134   :  { %4155 = vst [vmem:[#allocation33_spill] sm:$0xff] %v3523_v61  ;;  %v3525_v38 = vadd.f32 %v268_v32, %v168_v40  ;;  %v2345_v61 = vmul.f32 -1.442695, %v624_v4 }
 0x135   :  { %v272_v44 = vpop.f32.mrf.mxu1 }
 0x136   :  { %4156 = vst [vmem:[#allocation34_spill] sm:$0xff] %v3525_v38  ;;  %v3527_v42 = vadd.f32 %v272_v44, %v164_v36  ;;  %v172_v38 = vrot.slane %v159_v28, %v171_v63  ;;  %2927 = vpow2.f32 %v2345_v61 }
 0x137   :  { %v274_v50 = vpop.f32.mrf.mxu1 }
 0x138   :  { %4157 = vst [vmem:[#allocation35_spill] sm:$0xff] %v3527_v42  ;;  %v3529_v22 = vadd.f32 %v274_v50, %v168_v40 }
 0x139   :  { %v278_v0 = vpop.f32.mrf.mxu1 }
 0x13a   :  { %4158 = vst [vmem:[#allocation36_spill] sm:$0xff] %v3529_v22  ;;  %v3531_v3 = vadd.f32 %v278_v0, %v164_v36  ;;  %v551_v0 = vpop.f32.mrf.mxu0 }
 0x13b   :  { %v280_v20 = vpop.f32.mrf.mxu1 }
 0x13c   :  { %4159 = vst [vmem:[#allocation37_spill] sm:$0xff] %v3531_v3  ;;  %v3533_v59 = vadd.f32 %v280_v20, %v168_v40 }
 0x13d   :  { %v284_v26 = vpop.f32.mrf.mxu1 }
 0x13e   :  { %4160 = vst [vmem:[#allocation38_spill] sm:$0xff] %v3533_v59  ;;  %v3535_v32 = vadd.f32 %v284_v26, %v164_v36  ;;  %v631_v59 = vadd.f32 %v551_v0, %v245_v46  ;;  %v3556_v0 = vld [vmem:[%s4115_s4] ss:$0 sm:$0xff] }
 0x13f   :  { %v286_v30 = vpop.f32.mrf.mxu1 }
 0x140   :  { %4161 = vst [vmem:[#allocation39_spill] sm:$0xff] %v3535_v32  ;;  %v3537_v44 = vadd.f32 %v286_v30, %v168_v40  ;;  %v2346_v63 = vmul.f32 -1.442695, %v631_v59 }
 0x141   :  { %v2580_v42 = vpop.f32.mrf.mxu1 }
 0x142   :  { %4162 = vst [vmem:[#allocation40_spill] sm:$0xff] %v3537_v44  ;;  %v3539_v50 = vadd.f32 %v2580_v42, %v172_v38  ;;  %2929 = vpow2.f32 %v2346_v63 }
 0x143   :  { %v355_v22 = vpop.f32.mrf.mxu1  ;;  %v2928_v30 = vpop.eup %2927 }
 0x145   :  { %v2583_v48 = vpop.f32.mrf.mxu1 }
 0x146   :  { %v3541_v24 = vadd.f32 %v2583_v48, %v172_v38  ;;  %v628_v48 = vadd.f32 1.0, %v2928_v30 }
 0x147   :  { %v365_v20 = vpop.f32.mrf.mxu1 }
 0x148   :  { %v3543_v3 = vadd.f32 %v365_v20, %v172_v38  ;;  %2931 = vrcp.f32 %v628_v48 }
 0x149   :  { %v2586_v36 = vpop.f32.mrf.mxu1 }
 0x14a   :  { %v3545_v4 = vadd.f32 %v2586_v36, %v172_v38 }
 0x14b   :  { %v375_v28 = vpop.f32.mrf.mxu1 }
 0x14c   :  { %4163 = vst [vmem:[#allocation41_spill] sm:$0xff] %v3545_v4  ;;  %v3547_v26 = vadd.f32 %v375_v28, %v172_v38 }
 0x14d   :  { %v2589_v61 = vpop.f32.mrf.mxu1 }
 0x14e   :  { %4164 = vst [vmem:[#allocation42_spill] sm:$0xff] %v3547_v26  ;;  %v3549_v42 = vadd.f32 %v2589_v61, %v172_v38 }
 0x14f   :  { %v385_v34 = vpop.f32.mrf.mxu1  ;;  %v2930_v46 = vpop.eup %2929 }
 0x150   :  { %4165 = vst [vmem:[#allocation43_spill] sm:$0xff] %v3549_v42  ;;  %v3551_v40 = vadd.f32 %v385_v34, %v172_v38  ;;  %v635_v20 = vadd.f32 1.0, %v2930_v46  ;;  %v356_v42 = vadd.f32 %v355_v22, %v172_v38  ;;  %v4168_v38 = vmov 0.0   ;;  %v3726_v46 = vld [vmem:[#allocation9 + $0x98] sm:$0xff] }
 0x152   :  { %4166 = vst [vmem:[#allocation44_spill] sm:$0xff] %v3551_v40  ;;  %2933 = vrcp.f32 %v635_v20  ;;  %v3729_v20 = vld [vmem:[#allocation9 + $0x90] sm:$0xff] }
 0x155   :  { %v2932_v28 = vpop.eup %2931 }
 0x15f   :  { %v2934_v34 = vpop.eup %2933 }
 0x160   :  { %v642_v30 = vsub.f32 1.0, %v2934_v34  ;;  %v644_v40 = vmul.f32 %v2934_v34, %v3350_v7  ;;  %v3747_v34 = vld [vmem:[#allocation9 + $0x48] sm:$0xff] }
 0x161   :  { %v620_v59 = vpop.f32.mrf.mxu1 }
 0x162   :  { %v638_v36 = vadd.f32 %v3556_v0, %v620_v59  ;;  %v3732_v59 = vld [vmem:[#allocation9 + $0x80] sm:$0xff] }
 0x163   :  { %v2624_v61 = vpop.f32.mrf.mxu1 }
 0x164   :  { %v639_v44 = vmul.f32 %v2932_v28, %v638_v36  ;;  %v3735_v36 = vld [vmem:[#allocation9 + $0x78] sm:$0xff]  ;;  %v3738_v28 = vld [vmem:[#allocation9 + $0x68] sm:$0xff]  ;;  %v3741_v61 = vld [vmem:[#allocation9 + $0x60] sm:$0xff] }
 0x166   :  { %v640_v63 = vadd.f32 %v639_v44, %v356_v42  ;;  %v3716_v44 = vld [vmem:[#allocation9 + $0xc8] sm:$0xff]  ;;  %v3721_v42 = vld [vmem:[#allocation9 + $0xb0] sm:$0xff] }
 0x168   :  { %2935 = vtanh.f32 %v640_v63  ;;  %v3744_v63 = vld [vmem:[#allocation9 + $0x50] sm:$0xff] }
 0x175   :  { %v2936_v48 = vpop.eup %2935 }
 0x176   :  { %v643_v32 = vmul.f32 %v2936_v48, %v642_v30  ;;  %v3750_v30 = vld [vmem:[#allocation9 + $0x38] sm:$0xff]  ;;  %v3753_v48 = vld [vmem:[#allocation9 + $0x30] sm:$0xff] }
 0x178   :  { %v3560_v4 = vadd.f32 %v644_v40, %v643_v32  ;;  %v3723_v40 = vld [vmem:[#allocation9 + $0xa8] sm:$0xff] }
 0x17a   :  { %4167 = vst [vmem:[#allocation45_spill] sm:$0xff] %v3560_v4  ;;  %764 = vmatmul.mubr.f32.vlgmr.msra.gmra.mxu0 %v3560_v4  ;;  %2658 = vmatmul.mubr.f32.vlgmr.msra.gmra.mxu1 %v3560_v4 }
 0x17b   :  { %917 = vmatpush1.msra.mxu0 %v3252_v6  ;;  %2661 = vmatpush3.msra.mxu1 %v3384_v52  ;;  %v4169_v6 = vld [vmem:[#allocation21_spill] sm:$0xff] }
 0x17c   :  { %918 = vmatprep.subr.mxu0 %v3255_v8  ;;  %2662 = vmatprep.subr.mxu1 %v4168_v38  ;;  %v4170_v8 = vld [vmem:[#allocation22_spill] sm:$0xff] }
 0x17d   :  { %919 = vmatpush1.msra.mxu0 %v3258_v10  ;;  %2663 = vmatpush3.msra.mxu1 %v3390_v54  ;;  %v4171_v10 = vld [vmem:[#allocation25_spill] sm:$0xff] }
 0x17e   :  { %920 = vmatprep.subr.mxu0 %v3260_v11  ;;  %2664 = vmatprep.subr.mxu1 %v4168_v38  ;;  %v4172_v11 = vld [vmem:[#allocation23_spill] sm:$0xff] }
 0x17f   :  { %921 = vmatpush1.msra.mxu0 %v3263_v13  ;;  %2665 = vmatpush3.msra.mxu1 %v3395_v56  ;;  %v4173_v13 = vld [vmem:[#allocation24_spill] sm:$0xff] }
 0x180   :  { %922 = vmatprep.subr.mxu0 %v3266_v15  ;;  %2666 = vmatprep.subr.mxu1 %v4168_v38  ;;  %v4174_v15 = vld [vmem:[#allocation26_spill] sm:$0xff] }
 0x181   :  { %923 = vmatpush1.msra.mxu0 %v3269_v17  ;;  %2667 = vmatpush3.msra.mxu1 %v3401_v58 }
 0x182   :  { %924 = vmatprep.subr.mxu0 %v3272_v19  ;;  %2668 = vmatprep.subr.mxu1 %v4168_v38 }
 0x183   :  { %925 = vmatpush1.msra.mxu0 %v3275_v21  ;;  %2669 = vmatpush3.msra.mxu1 %v3406_v60  ;;  %v4175_v21 = vld [vmem:[#allocation27_spill] sm:$0xff] }
 0x184   :  { %926 = vmatprep.subr.mxu0 %v3278_v23  ;;  %2670 = vmatprep.subr.mxu1 %v4168_v38 }
 0x185   :  { %927 = vmatpush1.msra.mxu0 %v3281_v25  ;;  %2671 = vmatpush3.msra.mxu1 %v3412_v62 }
 0x186   :  { %928 = vmatprep.subr.mxu0 %v3284_v27  ;;  %2672 = vmatprep.subr.mxu1 %v4168_v38 }
 0x187   :  { %929 = vmatpush1.msra.mxu0 %v3287_v29  ;;  %2673 = vmatpush3.msra.mxu1 %v3416_v1 }
 0x188   :  { %930 = vmatprep.subr.mxu0 %v3290_v31  ;;  %2674 = vmatprep.subr.mxu1 %v4168_v38  ;;  %v4176_v31 = vld [vmem:[#allocation28_spill] sm:$0xff] }
 0x189   :  { %931 = vmatpush1.msra.mxu0 %v3293_v33  ;;  %2675 = vmatpush3.msra.mxu1 %v3422_v2 }
 0x18a   :  { %932 = vmatprep.subr.mxu0 %v3296_v35  ;;  %2676 = vmatprep.subr.mxu1 %v4168_v38 }
 0x18b   :  { %933 = vmatpush1.msra.mxu0 %v3299_v37  ;;  %2677 = vmatpush3.msra.mxu1 %v3428_v5 }
 0x18c   :  { %934 = vmatprep.subr.mxu0 %v3302_v39  ;;  %2678 = vmatprep.subr.mxu1 %v4168_v38 }
 0x18d   :  { %935 = vmatpush1.msra.mxu0 %v3305_v41  ;;  %2679 = vmatpush3.msra.mxu1 %v3434_v9 }
 0x18e   :  { %936 = vmatprep.subr.mxu0 %v3308_v43  ;;  %2680 = vmatprep.subr.mxu1 %v4168_v38 }
 0x18f   :  { %937 = vmatpush1.msra.mxu0 %v3311_v45  ;;  %2681 = vmatpush3.msra.mxu1 %v3440_v12 }
 0x190   :  { %938 = vmatprep.subr.mxu0 %v3314_v47  ;;  %2682 = vmatprep.subr.mxu1 %v4168_v38 }
 0x191   :  { %939 = vmatpush1.msra.mxu0 %v3317_v49  ;;  %2683 = vmatpush3.msra.mxu1 %v3446_v14 }
 0x192   :  { %940 = vmatprep.subr.mxu0 %v3320_v51  ;;  %2684 = vmatprep.subr.mxu1 %v4168_v38 }
 0x193   :  { %941 = vmatpush1.msra.mxu0 %v3323_v53  ;;  %2685 = vmatpush3.msra.mxu1 %v3452_v16 }
 0x194   :  { %942 = vmatprep.subr.mxu0 %v3326_v55  ;;  %2686 = vmatprep.subr.mxu1 %v4168_v38 }
 0x195   :  { %943 = vmatpush1.msra.mxu0 %v3329_v57  ;;  %2687 = vmatpush3.msra.mxu1 %v3458_v18 }
 0x196   :  { %944 = vmatprep.subr.mxu0 %v4169_v6  ;;  %2688 = vmatprep.subr.mxu1 %v4168_v38  ;;  %v3756_v6 = vld [vmem:[#allocation9 + $0x20] sm:$0xff] }
 0x197   :  { %945 = vmatpush1.msra.mxu0 %v4170_v8  ;;  %2689 = vmatpush3.msra.mxu1 %v4171_v10  ;;  %v3759_v8 = vld [vmem:[#allocation9 + $0x18] sm:$0xff] }
 0x198   :  { %946 = vmatprep.subr.mxu0 %v4172_v11  ;;  %2690 = vmatprep.subr.mxu1 %v4168_v38  ;;  %v3765_v11 = vld [vmem:[#allocation9] sm:$0xff] }
 0x199   :  { %947 = vmatpush1.msra.mxu0 %v4173_v13  ;;  %980 = vmatprep.mubr.f32.mxu0 %v4168_v38  ;;  %4180 = vst [vmem:[#allocation23_spill] sm:$0xff] %v3765_v11 }
 0x19a   :  { %2691 = vmatpush3.msra.mxu1 %v4174_v15  ;;  %2692 = vmatprep.mubr.msk.f32.mxu1 %vm3168_vm0, %v4168_v38 }
 0x19b   :  { %2695 = vmatprep.subr.mxu1 %v4168_v38 }
 0x23a   :  { %v765_v17 = vpop.f32.mrf.mxu0  ;;  %v836_v19 = vpop.f32.mrf.mxu1 }
 0x23b   :  { %v840_v23 = vadd.f32 %v765_v17, %v4175_v21  ;;  %v854_v45 = vadd.f32 %v3556_v0, %v836_v19  ;;  %v4181_v17 = vld [vmem:[#allocation29_spill] sm:$0xff] }
 0x23c   :  { %v2659_v25 = vpop.f32.mrf.mxu1  ;;  %v767_v29 = vpop.f32.mrf.mxu0 }
 0x23d   :  { %v2347_v27 = vmul.f32 -1.442695, %v840_v23  ;;  %v847_v33 = vadd.f32 %v767_v29, %v4176_v31 }
 0x23f   :  { %2937 = vpow2.f32 %v2347_v27  ;;  %v2348_v35 = vmul.f32 -1.442695, %v847_v33  ;;  %v4182_v27 = vld [vmem:[#allocation30_spill] sm:$0xff] }
 0x241   :  { %2939 = vpow2.f32 %v2348_v35 }
 0x24c   :  { %v2938_v37 = vpop.eup %2937 }
 0x24d   :  { %v844_v39 = vadd.f32 1.0, %v2938_v37 }
 0x24e   :  { %v2940_v41 = vpop.eup %2939 }
 0x24f   :  { %2941 = vrcp.f32 %v844_v39  ;;  %v851_v43 = vadd.f32 1.0, %v2940_v41 }
 0x251   :  { %2943 = vrcp.f32 %v851_v43 }
 0x25c   :  { %v2942_v47 = vpop.eup %2941 }
 0x25d   :  { %v855_v49 = vmul.f32 %v2942_v47, %v854_v45 }
 0x25e   :  { %v2944_v53 = vpop.eup %2943 }
 0x25f   :  { %v856_v51 = vadd.f32 %v855_v49, %v3539_v50  ;;  %v858_v55 = vsub.f32 1.0, %v2944_v53  ;;  %v860_v22 = vmul.f32 %v2944_v53, %v3560_v4  ;;  %v3719_v50 = vld [vmem:[#allocation9 + $0xc0] sm:$0xff] }
 0x261   :  { %2945 = vtanh.f32 %v856_v51 }
 0x26e   :  { %v2946_v57 = vpop.eup %2945 }
 0x26f   :  { %v859_v7 = vmul.f32 %v2946_v57, %v858_v55 }
 0x271   :  { %v3635_v32 = vadd.f32 %v860_v22, %v859_v7  ;;  %v3819_v22 = vld [vmem:[#allocation9 + $0x160] sm:$0xff] }
 0x273   :  { %4177 = vst [vmem:[#allocation21_spill] sm:$0xff] %v3635_v32  ;;  %981 = vmatmul.mubr.f32.vlgmr.msra.gmra.mxu0 %v3635_v32  ;;  %2693 = vmatmul.mubr.f32.vlgmr.msra.gmra.mxu1 %v3635_v32 }
 0x274   :  { %2696 = vmatpush3.msra.mxu1 %v3384_v52  ;;  %1197 = vmatprep.mubr.f32.mxu0 %v4168_v38  ;;  %v3674_v52 = vld [vmem:[#allocation9 + $0x170] sm:$0xff] }
 0x275   :  { %2697 = vmatprep.subr.mxu1 %v4168_v38  ;;  %2727 = vmatprep.mubr.msk.f32.mxu1 %vm3168_vm0, %v4168_v38  ;;  %4178 = vst [vmem:[#allocation22_spill] sm:$0xff] %v3674_v52 }
 0x276   :  { %2698 = vmatpush3.msra.mxu1 %v3390_v54  ;;  %1133 = vmatprep.subr.mxu0 %v3674_v52  ;;  %v3677_v54 = vld [vmem:[#allocation9 + $0x168] sm:$0xff] }
 0x277   :  { %2699 = vmatprep.subr.mxu1 %v4168_v38  ;;  %1134 = vmatpush1.msra.mxu0 %v3677_v54 }
 0x278   :  { %2700 = vmatpush3.msra.mxu1 %v3395_v56  ;;  %v3680_v56 = vld [vmem:[#allocation9 + $0x158] sm:$0xff] }
 0x279   :  { %2701 = vmatprep.subr.mxu1 %v4168_v38  ;;  %1135 = vmatprep.subr.mxu0 %v3680_v56 }
 0x27a   :  { %2702 = vmatpush3.msra.mxu1 %v3401_v58  ;;  %v3683_v58 = vld [vmem:[#allocation9 + $0x150] sm:$0xff] }
 0x27b   :  { %2703 = vmatprep.subr.mxu1 %v4168_v38  ;;  %1136 = vmatpush1.msra.mxu0 %v3683_v58 }
 0x27c   :  { %2704 = vmatpush3.msra.mxu1 %v3406_v60  ;;  %v3686_v60 = vld [vmem:[#allocation9 + $0x140] sm:$0xff] }
 0x27d   :  { %2705 = vmatprep.subr.mxu1 %v4168_v38  ;;  %1137 = vmatprep.subr.mxu0 %v3686_v60 }
 0x27e   :  { %2706 = vmatpush3.msra.mxu1 %v3412_v62  ;;  %v3689_v62 = vld [vmem:[#allocation9 + $0x138] sm:$0xff] }
 0x27f   :  { %2707 = vmatprep.subr.mxu1 %v4168_v38  ;;  %1138 = vmatpush1.msra.mxu0 %v3689_v62 }
 0x280   :  { %2708 = vmatpush3.msra.mxu1 %v3416_v1  ;;  %v3692_v1 = vld [vmem:[#allocation9 + $0x128] sm:$0xff] }
 0x281   :  { %2709 = vmatprep.subr.mxu1 %v4168_v38  ;;  %1139 = vmatprep.subr.mxu0 %v3692_v1 }
 0x282   :  { %2710 = vmatpush3.msra.mxu1 %v3422_v2  ;;  %v3695_v2 = vld [vmem:[#allocation9 + $0x120] sm:$0xff] }
 0x283   :  { %2711 = vmatprep.subr.mxu1 %v4168_v38  ;;  %1140 = vmatpush1.msra.mxu0 %v3695_v2 }
 0x284   :  { %2712 = vmatpush3.msra.mxu1 %v3428_v5  ;;  %v3698_v5 = vld [vmem:[#allocation9 + $0x110] sm:$0xff] }
 0x285   :  { %2713 = vmatprep.subr.mxu1 %v4168_v38  ;;  %1141 = vmatprep.subr.mxu0 %v3698_v5 }
 0x286   :  { %2714 = vmatpush3.msra.mxu1 %v3434_v9  ;;  %v3701_v9 = vld [vmem:[#allocation9 + $0x108] sm:$0xff] }
 0x287   :  { %2715 = vmatprep.subr.mxu1 %v4168_v38  ;;  %1142 = vmatpush1.msra.mxu0 %v3701_v9 }
 0x288   :  { %2716 = vmatpush3.msra.mxu1 %v3440_v12  ;;  %v3704_v12 = vld [vmem:[#allocation9 + $0xf8] sm:$0xff] }
 0x289   :  { %2717 = vmatprep.subr.mxu1 %v4168_v38  ;;  %1143 = vmatprep.subr.mxu0 %v3704_v12 }
 0x28a   :  { %2718 = vmatpush3.msra.mxu1 %v3446_v14  ;;  %v3707_v14 = vld [vmem:[#allocation9 + $0xf0] sm:$0xff] }
 0x28b   :  { %2719 = vmatprep.subr.mxu1 %v4168_v38  ;;  %1144 = vmatpush1.msra.mxu0 %v3707_v14 }
 0x28c   :  { %2720 = vmatpush3.msra.mxu1 %v3452_v16  ;;  %v3710_v16 = vld [vmem:[#allocation9 + $0xe0] sm:$0xff] }
 0x28d   :  { %2721 = vmatprep.subr.mxu1 %v4168_v38  ;;  %1145 = vmatprep.subr.mxu0 %v3710_v16 }
 0x28e   :  { %2722 = vmatpush3.msra.mxu1 %v3458_v18  ;;  %v3713_v18 = vld [vmem:[#allocation9 + $0xd8] sm:$0xff] }
 0x28f   :  { %2723 = vmatprep.subr.mxu1 %v4168_v38  ;;  %1146 = vmatpush1.msra.mxu0 %v3713_v18 }
 0x290   :  { %2724 = vmatpush3.msra.mxu1 %v4171_v10  ;;  %1147 = vmatprep.subr.mxu0 %v3716_v44  ;;  %v3762_v10 = vld [vmem:[#allocation9 + $0x8] sm:$0xff] }
 0x291   :  { %2725 = vmatprep.subr.mxu1 %v4168_v38  ;;  %1148 = vmatpush1.msra.mxu0 %v3719_v50  ;;  %4179 = vst [vmem:[#allocation25_spill] sm:$0xff] %v3762_v10 }
 0x292   :  { %2726 = vmatpush3.msra.mxu1 %v4174_v15  ;;  %1149 = vmatprep.subr.mxu0 %v3721_v42 }
 0x293   :  { %2730 = vmatprep.subr.mxu1 %v4168_v38  ;;  %1150 = vmatpush1.msra.mxu0 %v3723_v40 }
 0x294   :  { %1151 = vmatprep.subr.mxu0 %v3726_v46 }
 0x295   :  { %1152 = vmatpush1.msra.mxu0 %v3729_v20 }
 0x296   :  { %1153 = vmatprep.subr.mxu0 %v3732_v59 }
 0x297   :  { %1154 = vmatpush1.msra.mxu0 %v3735_v36 }
 0x298   :  { %1155 = vmatprep.subr.mxu0 %v3738_v28 }
 0x299   :  { %1156 = vmatpush1.msra.mxu0 %v3741_v61 }
 0x29a   :  { %1157 = vmatprep.subr.mxu0 %v3744_v63 }
 0x29b   :  { %1158 = vmatpush1.msra.mxu0 %v3747_v34 }
 0x29c   :  { %1159 = vmatprep.subr.mxu0 %v3750_v30 }
 0x29d   :  { %1160 = vmatpush1.msra.mxu0 %v3753_v48 }
 0x29e   :  { %1161 = vmatprep.subr.mxu0 %v3756_v6 }
 0x29f   :  { %1162 = vmatpush1.msra.mxu0 %v3759_v8 }
 0x2a0   :  { %1163 = vmatprep.subr.mxu0 %v3762_v10 }
 0x2a1   :  { %1164 = vmatpush1.msra.mxu0 %v3765_v11 }
 0x2a2   :  { %1350 = vmatprep.subr.mxu0 %v3674_v52 }
 0x333   :  { %v982_v13 = vpop.f32.mrf.mxu0  ;;  %v1053_v15 = vpop.f32.mrf.mxu1 }
 0x334   :  { %v1057_v19 = vadd.f32 %v982_v13, %v4181_v17  ;;  %v1071_v41 = vadd.f32 %v3556_v0, %v1053_v15  ;;  %v3823_v13 = vld [vmem:[#allocation9 + $0x148] sm:$0xff]  ;;  %v3827_v15 = vld [vmem:[#allocation9 + $0x130] sm:$0xff]  ;;  %v3831_v17 = vld [vmem:[#allocation9 + $0x118] sm:$0xff] }
 0x335   :  { %v2694_v21 = vpop.f32.mrf.mxu1  ;;  %v984_v25 = vpop.f32.mrf.mxu0 }
 0x336   :  { %v2349_v23 = vmul.f32 -1.442695, %v1057_v19  ;;  %v1064_v29 = vadd.f32 %v984_v25, %v4182_v27  ;;  %v3835_v19 = vld [vmem:[#allocation9 + $0x100] sm:$0xff]  ;;  %v3839_v21 = vld [vmem:[#allocation9 + $0xe8] sm:$0xff]  ;;  %v3845_v25 = vld [vmem:[#allocation9 + $0xb8] sm:$0xff] }
 0x337   :  { %v3849_v27 = vld [vmem:[#allocation9 + $0xa0] sm:$0xff] }
 0x338   :  { %2947 = vpow2.f32 %v2349_v23  ;;  %v2350_v31 = vmul.f32 -1.442695, %v1064_v29  ;;  %v3843_v23 = vld [vmem:[#allocation9 + $0xd0] sm:$0xff]  ;;  %v3853_v29 = vld [vmem:[#allocation9 + $0x88] sm:$0xff] }
 0x33a   :  { %2949 = vpow2.f32 %v2350_v31  ;;  %v3857_v31 = vld [vmem:[#allocation9 + $0x70] sm:$0xff] }
 0x345   :  { %v2948_v33 = vpop.eup %2947 }
 0x346   :  { %v1061_v35 = vadd.f32 1.0, %v2948_v33  ;;  %v3861_v33 = vld [vmem:[#allocation9 + $0x58] sm:$0xff] }
 0x347   :  { %v2950_v37 = vpop.eup %2949 }
 0x348   :  { %2951 = vrcp.f32 %v1061_v35  ;;  %v1068_v39 = vadd.f32 1.0, %v2950_v37  ;;  %v3865_v35 = vld [vmem:[#allocation9 + $0x40] sm:$0xff]  ;;  %v3869_v37 = vld [vmem:[#allocation9 + $0x28] sm:$0xff] }
 0x349   :  { %4184 = vst [vmem:[#allocation26_spill] sm:$0xff] %v3869_v37 }
 0x34a   :  { %2953 = vrcp.f32 %v1068_v39  ;;  %v3873_v39 = vld [vmem:[#allocation9 + $0x10] sm:$0xff] }
 0x34b   :  { %4185 = vst [vmem:[#allocation27_spill] sm:$0xff] %v3873_v39 }
 0x355   :  { %v2952_v43 = vpop.eup %2951 }
 0x356   :  { %v1072_v45 = vmul.f32 %v2952_v43, %v1071_v41 }
 0x357   :  { %v2954_v49 = vpop.eup %2953 }
 0x358   :  { %v1073_v47 = vadd.f32 %v1072_v45, %v3543_v3  ;;  %v1075_v51 = vsub.f32 1.0, %v2954_v49  ;;  %v1077_v57 = vmul.f32 %v2954_v49, %v3635_v32  ;;  %v3815_v3 = vld [vmem:[#allocation9 + $0x178] sm:$0xff] }
 0x359   :  { %v4186_v45 = vld [vmem:[#allocation31_spill] sm:$0xff] }
 0x35a   :  { %2955 = vtanh.f32 %v1073_v47 }
 0x367   :  { %v2956_v53 = vpop.eup %2955 }
 0x368   :  { %v1076_v55 = vmul.f32 %v2956_v53, %v1075_v51 }
 0x36a   :  { %v3776_v7 = vadd.f32 %v1077_v57, %v1076_v55  ;;  %v4187_v55 = vld [vmem:[#allocation32_spill] sm:$0xff] }
 0x36c   :  { %4183 = vst [vmem:[#allocation24_spill] sm:$0xff] %v3776_v7  ;;  %1198 = vmatmul.mubr.f32.vlgmr.msra.gmra.mxu0 %v3776_v7  ;;  %2728 = vmatmul.mubr.f32.vlgmr.msra.gmra.mxu1 %v3776_v7 }
 0x36d   :  { %1351 = vmatpush1.msra.mxu0 %v3677_v54  ;;  %1414 = vmatprep.mubr.f32.mxu0 %v4168_v38 }
 0x36e   :  { %1352 = vmatprep.subr.mxu0 %v3680_v56  ;;  %2762 = vmatprep.mubr.msk.f32.mxu1 %vm3168_vm0, %v4168_v38 }
 0x36f   :  { %1353 = vmatpush1.msra.mxu0 %v3683_v58  ;;  %2731 = vmatpush3.msra.mxu1 %v3815_v3 }
 0x370   :  { %1354 = vmatprep.subr.mxu0 %v3686_v60  ;;  %2732 = vmatprep.subr.mxu1 %v4168_v38 }
 0x371   :  { %1355 = vmatpush1.msra.mxu0 %v3689_v62  ;;  %2733 = vmatpush3.msra.mxu1 %v3819_v22 }
 0x372   :  { %1356 = vmatprep.subr.mxu0 %v3692_v1  ;;  %2734 = vmatprep.subr.mxu1 %v4168_v38 }
 0x373   :  { %1357 = vmatpush1.msra.mxu0 %v3695_v2  ;;  %2735 = vmatpush3.msra.mxu1 %v3823_v13 }
 0x374   :  { %1358 = vmatprep.subr.mxu0 %v3698_v5  ;;  %2736 = vmatprep.subr.mxu1 %v4168_v38 }
 0x375   :  { %1359 = vmatpush1.msra.mxu0 %v3701_v9  ;;  %2737 = vmatpush3.msra.mxu1 %v3827_v15 }
 0x376   :  { %1360 = vmatprep.subr.mxu0 %v3704_v12  ;;  %2738 = vmatprep.subr.mxu1 %v4168_v38 }
 0x377   :  { %1361 = vmatpush1.msra.mxu0 %v3707_v14  ;;  %2739 = vmatpush3.msra.mxu1 %v3831_v17 }
 0x378   :  { %1362 = vmatprep.subr.mxu0 %v3710_v16  ;;  %2740 = vmatprep.subr.mxu1 %v4168_v38 }
 0x379   :  { %1363 = vmatpush1.msra.mxu0 %v3713_v18  ;;  %2741 = vmatpush3.msra.mxu1 %v3835_v19 }
 0x37a   :  { %1364 = vmatprep.subr.mxu0 %v3716_v44  ;;  %2742 = vmatprep.subr.mxu1 %v4168_v38 }
 0x37b   :  { %1365 = vmatpush1.msra.mxu0 %v3719_v50  ;;  %2743 = vmatpush3.msra.mxu1 %v3839_v21 }
 0x37c   :  { %1366 = vmatprep.subr.mxu0 %v3721_v42  ;;  %2744 = vmatprep.subr.mxu1 %v4168_v38 }
 0x37d   :  { %1367 = vmatpush1.msra.mxu0 %v3723_v40  ;;  %2745 = vmatpush3.msra.mxu1 %v3843_v23 }
 0x37e   :  { %1368 = vmatprep.subr.mxu0 %v3726_v46  ;;  %2746 = vmatprep.subr.mxu1 %v4168_v38 }
 0x37f   :  { %1369 = vmatpush1.msra.mxu0 %v3729_v20  ;;  %2747 = vmatpush3.msra.mxu1 %v3845_v25 }
 0x380   :  { %1370 = vmatprep.subr.mxu0 %v3732_v59  ;;  %2748 = vmatprep.subr.mxu1 %v4168_v38 }
 0x381   :  { %1371 = vmatpush1.msra.mxu0 %v3735_v36  ;;  %2749 = vmatpush3.msra.mxu1 %v3849_v27 }
 0x382   :  { %1372 = vmatprep.subr.mxu0 %v3738_v28  ;;  %2750 = vmatprep.subr.mxu1 %v4168_v38 }
 0x383   :  { %1373 = vmatpush1.msra.mxu0 %v3741_v61  ;;  %2751 = vmatpush3.msra.mxu1 %v3853_v29 }
 0x384   :  { %1374 = vmatprep.subr.mxu0 %v3744_v63  ;;  %2752 = vmatprep.subr.mxu1 %v4168_v38 }
 0x385   :  { %1375 = vmatpush1.msra.mxu0 %v3747_v34  ;;  %2753 = vmatpush3.msra.mxu1 %v3857_v31 }
 0x386   :  { %1376 = vmatprep.subr.mxu0 %v3750_v30  ;;  %2754 = vmatprep.subr.mxu1 %v4168_v38 }
 0x387   :  { %1377 = vmatpush1.msra.mxu0 %v3753_v48  ;;  %2755 = vmatpush3.msra.mxu1 %v3861_v33 }
 0x388   :  { %1378 = vmatprep.subr.mxu0 %v3756_v6  ;;  %2756 = vmatprep.subr.mxu1 %v4168_v38 }
 0x389   :  { %1379 = vmatpush1.msra.mxu0 %v3759_v8  ;;  %2757 = vmatpush3.msra.mxu1 %v3865_v35 }
 0x38a   :  { %1380 = vmatprep.subr.mxu0 %v3762_v10  ;;  %2758 = vmatprep.subr.mxu1 %v4168_v38 }
 0x38b   :  { %1381 = vmatpush1.msra.mxu0 %v3765_v11  ;;  %2759 = vmatpush3.msra.mxu1 %v3869_v37 }
 0x38c   :  { %1567 = vmatprep.subr.mxu0 %v3674_v52  ;;  %2760 = vmatprep.subr.mxu1 %v4168_v38 }
 0x38d   :  { %2761 = vmatpush3.msra.mxu1 %v3873_v39 }
 0x38e   :  { %2765 = vmatprep.subr.mxu1 %v4168_v38 }
 0x42c   :  { %v1199_v41 = vpop.f32.mrf.mxu0  ;;  %v1270_v43 = vpop.f32.mrf.mxu1 }
 0x42d   :  { %v1274_v47 = vadd.f32 %v1199_v41, %v4186_v45  ;;  %v1288_v39 = vadd.f32 %v3556_v0, %v1270_v43 }
 0x42e   :  { %v2729_v49 = vpop.f32.mrf.mxu1  ;;  %v1201_v53 = vpop.f32.mrf.mxu0 }
 0x42f   :  { %v2351_v51 = vmul.f32 -1.442695, %v1274_v47  ;;  %v1281_v57 = vadd.f32 %v1201_v53, %v4187_v55 }
 0x431   :  { %2957 = vpow2.f32 %v2351_v51  ;;  %v2352_v32 = vmul.f32 -1.442695, %v1281_v57 }
 0x433   :  { %2959 = vpow2.f32 %v2352_v32 }
 0x43e   :  { %v2958_v4 = vpop.eup %2957 }
 0x43f   :  { %v1278_v26 = vadd.f32 1.0, %v2958_v4  ;;  %v4189_v4 = vld [vmem:[#allocation25_spill] sm:$0xff] }
 0x440   :  { %v2960_v52 = vpop.eup %2959 }
 0x441   :  { %2961 = vrcp.f32 %v1278_v26  ;;  %v1285_v11 = vadd.f32 1.0, %v2960_v52  ;;  %v4190_v26 = vld [vmem:[#allocation23_spill] sm:$0xff] }
 0x442   :  { %v4191_v52 = vld [vmem:[#allocation27_spill] sm:$0xff] }
 0x443   :  { %2963 = vrcp.f32 %v1285_v11 }
 0x44e   :  { %v2962_v10 = vpop.eup %2961 }
 0x44f   :  { %v1289_v37 = vmul.f32 %v2962_v10, %v1288_v39  ;;  %v4192_v10 = vld [vmem:[#allocation22_spill] sm:$0xff]  ;;  %v4193_v39 = vld [vmem:[#allocation33_spill] sm:$0xff] }
 0x450   :  { %v2964_v45 = vpop.eup %2963 }
 0x451   :  { %v1290_v41 = vadd.f32 %v1289_v37, %v3541_v24  ;;  %v1292_v47 = vsub.f32 1.0, %v2964_v45  ;;  %v1294_v53 = vmul.f32 %v2964_v45, %v3776_v7  ;;  %v4188_v24 = vld [vmem:[#allocation26_spill] sm:$0xff] }
 0x452   :  { %v4194_v45 = vld [vmem:[#allocation34_spill] sm:$0xff] }
 0x453   :  { %2965 = vtanh.f32 %v1290_v41 }
 0x460   :  { %v2966_v49 = vpop.eup %2965 }
 0x461   :  { %v1293_v51 = vmul.f32 %v2966_v49, %v1292_v47 }
 0x463   :  { %v3884_v32 = vadd.f32 %v1294_v53, %v1293_v51 }
 0x465   :  { %1415 = vmatmul.mubr.f32.vlgmr.msra.gmra.mxu0 %v3884_v32  ;;  %2763 = vmatmul.mubr.f32.vlgmr.msra.gmra.mxu1 %v3884_v32 }
 0x466   :  { %1568 = vmatpush1.msra.mxu0 %v3677_v54  ;;  %2766 = vmatpush3.msra.mxu1 %v3815_v3 }
 0x467   :  { %1569 = vmatprep.subr.mxu0 %v3680_v56  ;;  %2767 = vmatprep.subr.mxu1 %v4168_v38 }
 0x468   :  { %1570 = vmatpush1.msra.mxu0 %v3683_v58  ;;  %2768 = vmatpush3.msra.mxu1 %v3819_v22 }
 0x469   :  { %1571 = vmatprep.subr.mxu0 %v3686_v60  ;;  %2769 = vmatprep.subr.mxu1 %v4168_v38 }
 0x46a   :  { %1572 = vmatpush1.msra.mxu0 %v3689_v62  ;;  %2770 = vmatpush3.msra.mxu1 %v3823_v13 }
 0x46b   :  { %1573 = vmatprep.subr.mxu0 %v3692_v1  ;;  %2771 = vmatprep.subr.mxu1 %v4168_v38 }
 0x46c   :  { %1574 = vmatpush1.msra.mxu0 %v3695_v2  ;;  %2772 = vmatpush3.msra.mxu1 %v3827_v15 }
 0x46d   :  { %1575 = vmatprep.subr.mxu0 %v3698_v5  ;;  %2773 = vmatprep.subr.mxu1 %v4168_v38 }
 0x46e   :  { %1576 = vmatpush1.msra.mxu0 %v3701_v9  ;;  %2774 = vmatpush3.msra.mxu1 %v3831_v17 }
 0x46f   :  { %1577 = vmatprep.subr.mxu0 %v3704_v12  ;;  %2775 = vmatprep.subr.mxu1 %v4168_v38 }
 0x470   :  { %1578 = vmatpush1.msra.mxu0 %v3707_v14  ;;  %2776 = vmatpush3.msra.mxu1 %v3835_v19 }
 0x471   :  { %1579 = vmatprep.subr.mxu0 %v3710_v16  ;;  %2777 = vmatprep.subr.mxu1 %v4168_v38 }
 0x472   :  { %1580 = vmatpush1.msra.mxu0 %v3713_v18  ;;  %2778 = vmatpush3.msra.mxu1 %v3839_v21 }
 0x473   :  { %1581 = vmatprep.subr.mxu0 %v3716_v44  ;;  %2779 = vmatprep.subr.mxu1 %v4168_v38 }
 0x474   :  { %1582 = vmatpush1.msra.mxu0 %v3719_v50  ;;  %2780 = vmatpush3.msra.mxu1 %v3843_v23 }
 0x475   :  { %1583 = vmatprep.subr.mxu0 %v3721_v42  ;;  %2781 = vmatprep.subr.mxu1 %v4168_v38 }
 0x476   :  { %1584 = vmatpush1.msra.mxu0 %v3723_v40  ;;  %2782 = vmatpush3.msra.mxu1 %v3845_v25 }
 0x477   :  { %1585 = vmatprep.subr.mxu0 %v3726_v46  ;;  %2783 = vmatprep.subr.mxu1 %v4168_v38 }
 0x478   :  { %1586 = vmatpush1.msra.mxu0 %v3729_v20  ;;  %2784 = vmatpush3.msra.mxu1 %v3849_v27 }
 0x479   :  { %1587 = vmatprep.subr.mxu0 %v3732_v59  ;;  %2785 = vmatprep.subr.mxu1 %v4168_v38 }
 0x47a   :  { %1588 = vmatpush1.msra.mxu0 %v3735_v36  ;;  %2786 = vmatpush3.msra.mxu1 %v3853_v29 }
 0x47b   :  { %1589 = vmatprep.subr.mxu0 %v3738_v28  ;;  %2787 = vmatprep.subr.mxu1 %v4168_v38 }
 0x47c   :  { %1590 = vmatpush1.msra.mxu0 %v3741_v61  ;;  %2788 = vmatpush3.msra.mxu1 %v3857_v31 }
 0x47d   :  { %1591 = vmatprep.subr.mxu0 %v3744_v63  ;;  %2789 = vmatprep.subr.mxu1 %v4168_v38 }
 0x47e   :  { %1592 = vmatpush1.msra.mxu0 %v3747_v34  ;;  %2790 = vmatpush3.msra.mxu1 %v3861_v33 }
 0x47f   :  { %1593 = vmatprep.subr.mxu0 %v3750_v30  ;;  %2791 = vmatprep.subr.mxu1 %v4168_v38 }
 0x480   :  { %1594 = vmatpush1.msra.mxu0 %v3753_v48  ;;  %2792 = vmatpush3.msra.mxu1 %v3865_v35 }
 0x481   :  { %1595 = vmatprep.subr.mxu0 %v3756_v6  ;;  %2793 = vmatprep.subr.mxu1 %v4168_v38 }
 0x482   :  { %1596 = vmatpush1.msra.mxu0 %v3759_v8  ;;  %2794 = vmatpush3.msra.mxu1 %v4188_v24  ;;  %v4195_v24 = vld [vmem:[#allocation42_spill] sm:$0xff] }
 0x483   :  { %1597 = vmatprep.subr.mxu0 %v4189_v4  ;;  %2795 = vmatprep.subr.mxu1 %v4168_v38 }
 0x484   :  { %1598 = vmatpush1.msra.mxu0 %v4190_v26  ;;  %1631 = vmatprep.mubr.f32.mxu0 %v4168_v38 }
 0x485   :  { %2796 = vmatpush3.msra.mxu1 %v4191_v52  ;;  %2797 = vmatprep.mubr.msk.f32.mxu1 %vm3168_vm0, %v4168_v38 }
 0x486   :  { %1784 = vmatprep.subr.mxu0 %v4192_v10  ;;  %2800 = vmatprep.subr.mxu1 %v4168_v38 }
 0x525   :  { %v1416_v11 = vpop.f32.mrf.mxu0  ;;  %v1487_v37 = vpop.f32.mrf.mxu1 }
 0x526   :  { %v1491_v43 = vadd.f32 %v1416_v11, %v4193_v39  ;;  %v1505_v10 = vadd.f32 %v3556_v0, %v1487_v37  ;;  %v4196_v0 = vld [vmem:[#allocation26_spill] sm:$0xff]  ;;  %v1969_v37 = vld [vmem:[#allocation9 + $0x80] sm:$0xff] }
 0x527   :  { %v2764_v55 = vpop.f32.mrf.mxu1  ;;  %v1418_v41 = vpop.f32.mrf.mxu0 }
 0x528   :  { %v2353_v57 = vmul.f32 -1.442695, %v1491_v43  ;;  %v1498_v47 = vadd.f32 %v1418_v41, %v4194_v45 }
 0x52a   :  { %2967 = vpow2.f32 %v2353_v57  ;;  %v2354_v49 = vmul.f32 -1.442695, %v1498_v47  ;;  %v1968_v47 = vld [vmem:[#allocation9 + $0x78] sm:$0xff] }
 0x52c   :  { %2969 = vpow2.f32 %v2354_v49  ;;  %v1966_v49 = vld [vmem:[#allocation9 + $0x68] sm:$0xff] }
 0x537   :  { %v2968_v51 = vpop.eup %2967 }
 0x538   :  { %v1495_v53 = vadd.f32 1.0, %v2968_v51  ;;  %v1965_v51 = vld [vmem:[#allocation9 + $0x60] sm:$0xff] }
 0x539   :  { %v2970_v7 = vpop.eup %2969 }
 0x53a   :  { %2971 = vrcp.f32 %v1495_v53  ;;  %v1502_v52 = vadd.f32 1.0, %v2970_v7  ;;  %v1999_v7 = vld [vmem:[#allocation9 + $0x170] sm:$0xff] }
 0x53b   :  { %v1963_v53 = vld [vmem:[#allocation9 + $0x50] sm:$0xff] }
 0x53c   :  { %2973 = vrcp.f32 %v1502_v52  ;;  %v1971_v52 = vld [vmem:[#allocation9 + $0x90] sm:$0xff] }
 0x547   :  { %v2972_v26 = vpop.eup %2971 }
 0x548   :  { %v1506_v4 = vmul.f32 %v2972_v26, %v1505_v10  ;;  %v1972_v26 = vld [vmem:[#allocation9 + $0x98] sm:$0xff]  ;;  %v1962_v10 = vld [vmem:[#allocation9 + $0x48] sm:$0xff] }
 0x549   :  { %v2974_v39 = vpop.eup %2973 }
 0x54a   :  { %v1507_v11 = vadd.f32 %v1506_v4, %v4195_v24  ;;  %v1509_v43 = vsub.f32 1.0, %v2974_v39  ;;  %v1511_v41 = vmul.f32 %v2974_v39, %v3884_v32  ;;  %v1975_v24 = vld [vmem:[#allocation9 + $0xb0] sm:$0xff]  ;;  %v1974_v4 = vld [vmem:[#allocation9 + $0xa8] sm:$0xff] }
 0x54b   :  { %v1959_v39 = vld [vmem:[#allocation9 + $0x30] sm:$0xff] }
 0x54c   :  { %2975 = vtanh.f32 %v1507_v11  ;;  %v1960_v11 = vld [vmem:[#allocation9 + $0x38] sm:$0xff] }
 0x559   :  { %v2976_v55 = vpop.eup %2975 }
 0x55a   :  { %v1510_v57 = vmul.f32 %v2976_v55, %v1509_v43  ;;  %v1957_v43 = vld [vmem:[#allocation9 + $0x20] sm:$0xff]  ;;  %v1956_v55 = vld [vmem:[#allocation9 + $0x18] sm:$0xff] }
 0x55c   :  { %v3960_v45 = vadd.f32 %v1511_v41, %v1510_v57  ;;  %v1954_v57 = vld [vmem:[#allocation9 + $0x8] sm:$0xff]  ;;  %v1953_v41 = vld [vmem:[#allocation9] sm:$0xff] }
 0x55e   :  { %1632 = vmatmul.mubr.f32.vlgmr.msra.gmra.mxu0 %v3960_v45  ;;  %2798 = vmatmul.mubr.f32.vlgmr.msra.gmra.mxu1 %v3960_v45 }
 0x55f   :  { %1785 = vmatpush1.msra.mxu0 %v3677_v54  ;;  %2801 = vmatpush3.msra.mxu1 %v3815_v3  ;;  %v4197_v54 = vld [vmem:[#allocation25_spill] sm:$0xff] }
 0x560   :  { %1786 = vmatprep.subr.mxu0 %v3680_v56  ;;  %2802 = vmatprep.subr.mxu1 %v4168_v38  ;;  %v4198_v56 = vld [vmem:[#allocation23_spill] sm:$0xff] }
 0x561   :  { %1787 = vmatpush1.msra.mxu0 %v3683_v58  ;;  %2803 = vmatpush3.msra.mxu1 %v3819_v22  ;;  %v4199_v58 = vld [vmem:[#allocation27_spill] sm:$0xff] }
 0x562   :  { %1788 = vmatprep.subr.mxu0 %v3686_v60  ;;  %2804 = vmatprep.subr.mxu1 %v4168_v38 }
 0x563   :  { %1789 = vmatpush1.msra.mxu0 %v3689_v62  ;;  %2805 = vmatpush3.msra.mxu1 %v3823_v13 }
 0x564   :  { %1790 = vmatprep.subr.mxu0 %v3692_v1  ;;  %2806 = vmatprep.subr.mxu1 %v4168_v38  ;;  %v4200_v1 = vld [vmem:[#allocation35_spill] sm:$0xff] }
 0x565   :  { %1791 = vmatpush1.msra.mxu0 %v3695_v2  ;;  %2807 = vmatpush3.msra.mxu1 %v3827_v15 }
 0x566   :  { %1792 = vmatprep.subr.mxu0 %v3698_v5  ;;  %2808 = vmatprep.subr.mxu1 %v4168_v38 }
 0x567   :  { %1793 = vmatpush1.msra.mxu0 %v3701_v9  ;;  %2809 = vmatpush3.msra.mxu1 %v3831_v17 }
 0x568   :  { %1794 = vmatprep.subr.mxu0 %v3704_v12  ;;  %2810 = vmatprep.subr.mxu1 %v4168_v38 }
 0x569   :  { %1795 = vmatpush1.msra.mxu0 %v3707_v14  ;;  %2811 = vmatpush3.msra.mxu1 %v3835_v19  ;;  %v4201_v14 = vld [vmem:[#allocation36_spill] sm:$0xff] }
 0x56a   :  { %1796 = vmatprep.subr.mxu0 %v3710_v16  ;;  %2812 = vmatprep.subr.mxu1 %v4168_v38 }
 0x56b   :  { %1797 = vmatpush1.msra.mxu0 %v3713_v18  ;;  %2813 = vmatpush3.msra.mxu1 %v3839_v21 }
 0x56c   :  { %1798 = vmatprep.subr.mxu0 %v3716_v44  ;;  %2814 = vmatprep.subr.mxu1 %v4168_v38 }
 0x56d   :  { %1799 = vmatpush1.msra.mxu0 %v3719_v50  ;;  %2815 = vmatpush3.msra.mxu1 %v3843_v23 }
 0x56e   :  { %1800 = vmatprep.subr.mxu0 %v3721_v42  ;;  %2816 = vmatprep.subr.mxu1 %v4168_v38 }
 0x56f   :  { %1801 = vmatpush1.msra.mxu0 %v3723_v40  ;;  %2817 = vmatpush3.msra.mxu1 %v3845_v25 }
 0x570   :  { %1802 = vmatprep.subr.mxu0 %v3726_v46  ;;  %2818 = vmatprep.subr.mxu1 %v4168_v38  ;;  %v4035_v46 = vld [vmem:[%s4115_s4] ss:$0 sm:$0xff] }
 0x571   :  { %1803 = vmatpush1.msra.mxu0 %v3729_v20  ;;  %2819 = vmatpush3.msra.mxu1 %v3849_v27 }
 0x572   :  { %1804 = vmatprep.subr.mxu0 %v3732_v59  ;;  %2820 = vmatprep.subr.mxu1 %v4168_v38 }
 0x573   :  { %1805 = vmatpush1.msra.mxu0 %v3735_v36  ;;  %2821 = vmatpush3.msra.mxu1 %v3853_v29 }
 0x574   :  { %1806 = vmatprep.subr.mxu0 %v3738_v28  ;;  %2822 = vmatprep.subr.mxu1 %v4168_v38  ;;  %v4202_v28 = vld [vmem:[#allocation41_spill] sm:$0xff] }
 0x575   :  { %1807 = vmatpush1.msra.mxu0 %v3741_v61  ;;  %2823 = vmatpush3.msra.mxu1 %v3857_v31 }
 0x576   :  { %1808 = vmatprep.subr.mxu0 %v3744_v63  ;;  %2824 = vmatprep.subr.mxu1 %v4168_v38 }
 0x577   :  { %1809 = vmatpush1.msra.mxu0 %v3747_v34  ;;  %2825 = vmatpush3.msra.mxu1 %v3861_v33 }
 0x578   :  { %1810 = vmatprep.subr.mxu0 %v3750_v30  ;;  %2826 = vmatprep.subr.mxu1 %v4168_v38 }
 0x579   :  { %1811 = vmatpush1.msra.mxu0 %v3753_v48  ;;  %2827 = vmatpush3.msra.mxu1 %v3865_v35 }
 0x57a   :  { %1812 = vmatprep.subr.mxu0 %v3756_v6  ;;  %2828 = vmatprep.subr.mxu1 %v4168_v38 }
 0x57b   :  { %1813 = vmatpush1.msra.mxu0 %v3759_v8  ;;  %2829 = vmatpush3.msra.mxu1 %v4196_v0 }
 0x57c   :  { %1814 = vmatprep.subr.mxu0 %v4197_v54  ;;  %2830 = vmatprep.subr.mxu1 %v4168_v38 }
 0x57d   :  { %1815 = vmatpush1.msra.mxu0 %v4198_v56  ;;  %1848 = vmatprep.mubr.f32.mxu0 %v4168_v38 }
 0x57e   :  { %2831 = vmatpush3.msra.mxu1 %v4199_v58  ;;  %2832 = vmatprep.mubr.msk.f32.mxu1 %vm3168_vm0, %v4168_v38 }
 0x57f   :  { %2835 = vmatprep.subr.mxu1 %v4168_v38  ;;  %2001 = vmatprep.subr.mxu0 %v1999_v7  ;;  %v2188_v7 = vld [vmem:[#allocation12 + $0x68] sm:$0xff] }
 0x61e   :  { %v1633_v60 = vpop.f32.mrf.mxu0  ;;  %v1704_v62 = vpop.f32.mrf.mxu1 }
 0x61f   :  { %v1708_v2 = vadd.f32 %v1633_v60, %v4200_v1  ;;  %v1722_v20 = vadd.f32 %v4035_v46, %v1704_v62 }
 0x620   :  { %v2799_v5 = vpop.f32.mrf.mxu1  ;;  %v1635_v12 = vpop.f32.mrf.mxu0 }
 0x621   :  { %v2355_v9 = vmul.f32 -1.442695, %v1708_v2  ;;  %v1715_v16 = vadd.f32 %v1635_v12, %v4201_v14  ;;  %v4204_v5 = vld [vmem:[#allocation38_spill] sm:$0xff] }
 0x623   :  { %2977 = vpow2.f32 %v2355_v9  ;;  %v2356_v18 = vmul.f32 -1.442695, %v1715_v16 }
 0x625   :  { %2979 = vpow2.f32 %v2356_v18 }
 0x630   :  { %v2978_v44 = vpop.eup %2977 }
 0x631   :  { %v1712_v50 = vadd.f32 1.0, %v2978_v44 }
 0x632   :  { %v2980_v42 = vpop.eup %2979 }
 0x633   :  { %2981 = vrcp.f32 %v1712_v50  ;;  %v1719_v40 = vadd.f32 1.0, %v2980_v42 }
 0x635   :  { %2983 = vrcp.f32 %v1719_v40 }
 0x640   :  { %v2982_v59 = vpop.eup %2981 }
 0x641   :  { %v1723_v36 = vmul.f32 %v2982_v59, %v1722_v20  ;;  %v4205_v20 = vld [vmem:[#allocation44_spill] sm:$0xff] }
 0x642   :  { %v2984_v63 = vpop.eup %2983 }
 0x643   :  { %v1724_v61 = vadd.f32 %v1723_v36, %v4202_v28  ;;  %v1726_v34 = vsub.f32 1.0, %v2984_v63  ;;  %v1728_v6 = vmul.f32 %v2984_v63, %v3960_v45 }
 0x645   :  { %2985 = vtanh.f32 %v1724_v61 }
 0x652   :  { %v2986_v30 = vpop.eup %2985 }
 0x653   :  { %v1727_v48 = vmul.f32 %v2986_v30, %v1726_v34 }
 0x655   :  { %v4040_v8 = vadd.f32 %v1728_v6, %v1727_v48  ;;  %v2189_v48 = vld [vmem:[#allocation12 + $0x70] sm:$0xff]  ;;  %v4206_v6 = vld [vmem:[#allocation45_spill] sm:$0xff] }
 0x657   :  { %1849 = vmatmul.mubr.f32.vlgmr.msra.gmra.mxu0 %v4040_v8  ;;  %2833 = vmatmul.mubr.f32.vlgmr.msra.gmra.mxu1 %v4040_v8 }
 0x658   :  { %2836 = vmatpush3.msra.mxu1 %v3815_v3  ;;  %2065 = vmatprep.mubr.f32.mxu0 %v4168_v38  ;;  %v1998_v3 = vld [vmem:[#allocation9 + $0x168] sm:$0xff] }
 0x659   :  { %2837 = vmatprep.subr.mxu1 %v4168_v38  ;;  %2867 = vmatprep.mubr.msk.f32.mxu1 %vm3168_vm0, %v4168_v38 }
 0x65a   :  { %2838 = vmatpush3.msra.mxu1 %v3819_v22  ;;  %2002 = vmatpush1.msra.mxu0 %v1998_v3  ;;  %v1996_v22 = vld [vmem:[#allocation9 + $0x158] sm:$0xff]  ;;  %v2187_v3 = vld [vmem:[#allocation12 + $0x60] sm:$0xff] }
 0x65b   :  { %2839 = vmatprep.subr.mxu1 %v4168_v38  ;;  %2003 = vmatprep.subr.mxu0 %v1996_v22  ;;  %v2186_v22 = vld [vmem:[#allocation12 + $0x58] sm:$0xff] }
 0x65c   :  { %2840 = vmatpush3.msra.mxu1 %v3823_v13  ;;  %v1995_v13 = vld [vmem:[#allocation9 + $0x150] sm:$0xff] }
 0x65d   :  { %2841 = vmatprep.subr.mxu1 %v4168_v38  ;;  %2004 = vmatpush1.msra.mxu0 %v1995_v13  ;;  %v2185_v13 = vld [vmem:[#allocation12 + $0x50] sm:$0xff] }
 0x65e   :  { %2842 = vmatpush3.msra.mxu1 %v3827_v15  ;;  %v1993_v15 = vld [vmem:[#allocation9 + $0x140] sm:$0xff] }
 0x65f   :  { %2843 = vmatprep.subr.mxu1 %v4168_v38  ;;  %2005 = vmatprep.subr.mxu0 %v1993_v15  ;;  %v2184_v15 = vld [vmem:[#allocation12 + $0x48] sm:$0xff] }
 0x660   :  { %2844 = vmatpush3.msra.mxu1 %v3831_v17  ;;  %v1992_v17 = vld [vmem:[#allocation9 + $0x138] sm:$0xff] }
 0x661   :  { %2845 = vmatprep.subr.mxu1 %v4168_v38  ;;  %2006 = vmatpush1.msra.mxu0 %v1992_v17  ;;  %v2183_v17 = vld [vmem:[#allocation12 + $0x40] sm:$0xff] }
 0x662   :  { %2846 = vmatpush3.msra.mxu1 %v3835_v19  ;;  %v1990_v19 = vld [vmem:[#allocation9 + $0x128] sm:$0xff] }
 0x663   :  { %2847 = vmatprep.subr.mxu1 %v4168_v38  ;;  %2007 = vmatprep.subr.mxu0 %v1990_v19  ;;  %v2182_v19 = vld [vmem:[#allocation12 + $0x38] sm:$0xff] }
 0x664   :  { %2848 = vmatpush3.msra.mxu1 %v3839_v21  ;;  %v1989_v21 = vld [vmem:[#allocation9 + $0x120] sm:$0xff] }
 0x665   :  { %2849 = vmatprep.subr.mxu1 %v4168_v38  ;;  %2008 = vmatpush1.msra.mxu0 %v1989_v21  ;;  %v2181_v21 = vld [vmem:[#allocation12 + $0x30] sm:$0xff] }
 0x666   :  { %2850 = vmatpush3.msra.mxu1 %v3843_v23  ;;  %v1987_v23 = vld [vmem:[#allocation9 + $0x110] sm:$0xff] }
 0x667   :  { %2851 = vmatprep.subr.mxu1 %v4168_v38  ;;  %2009 = vmatprep.subr.mxu0 %v1987_v23  ;;  %v2180_v23 = vld [vmem:[#allocation12 + $0x28] sm:$0xff] }
 0x668   :  { %2852 = vmatpush3.msra.mxu1 %v3845_v25  ;;  %v1984_v25 = vld [vmem:[#allocation9 + $0xf8] sm:$0xff] }
 0x669   :  { %2853 = vmatprep.subr.mxu1 %v4168_v38 }
 0x66a   :  { %2854 = vmatpush3.msra.mxu1 %v3849_v27  ;;  %v1983_v27 = vld [vmem:[#allocation9 + $0xf0] sm:$0xff] }
 0x66b   :  { %2855 = vmatprep.subr.mxu1 %v4168_v38 }
 0x66c   :  { %2856 = vmatpush3.msra.mxu1 %v3853_v29  ;;  %v1981_v29 = vld [vmem:[#allocation9 + $0xe0] sm:$0xff] }
 0x66d   :  { %2857 = vmatprep.subr.mxu1 %v4168_v38 }
 0x66e   :  { %2858 = vmatpush3.msra.mxu1 %v3857_v31  ;;  %v1980_v31 = vld [vmem:[#allocation9 + $0xd8] sm:$0xff] }
 0x66f   :  { %2859 = vmatprep.subr.mxu1 %v4168_v38 }
 0x670   :  { %2860 = vmatpush3.msra.mxu1 %v3861_v33  ;;  %v1978_v33 = vld [vmem:[#allocation9 + $0xc8] sm:$0xff] }
 0x671   :  { %2861 = vmatprep.subr.mxu1 %v4168_v38 }
 0x672   :  { %2862 = vmatpush3.msra.mxu1 %v3865_v35  ;;  %v1977_v35 = vld [vmem:[#allocation9 + $0xc0] sm:$0xff] }
 0x673   :  { %2863 = vmatprep.subr.mxu1 %v4168_v38 }
 0x674   :  { %2864 = vmatpush3.msra.mxu1 %v4196_v0  ;;  %v2190_v0 = vld [vmem:[#allocation12 + $0x78] sm:$0xff] }
 0x675   :  { %2865 = vmatprep.subr.mxu1 %v4168_v38  ;;  %v1986_v38 = vld [vmem:[#allocation9 + $0x108] sm:$0xff] }
 0x676   :  { %2866 = vmatpush3.msra.mxu1 %v4199_v58  ;;  %2010 = vmatpush1.msra.mxu0 %v1986_v38  ;;  %v4203_v58 = vld [vmem:[#allocation37_spill] sm:$0xff]  ;;  %v2179_v38 = vld [vmem:[#allocation12 + $0x20] sm:$0xff] }
 0x677   :  { %2011 = vmatprep.subr.mxu0 %v1984_v25  ;;  %v2178_v25 = vld [vmem:[#allocation12 + $0x18] sm:$0xff] }
 0x678   :  { %2012 = vmatpush1.msra.mxu0 %v1983_v27  ;;  %v2177_v27 = vld [vmem:[#allocation12 + $0x10] sm:$0xff] }
 0x679   :  { %2013 = vmatprep.subr.mxu0 %v1981_v29  ;;  %v2176_v29 = vld [vmem:[#allocation12 + $0x8] sm:$0xff] }
 0x67a   :  { %2014 = vmatpush1.msra.mxu0 %v1980_v31  ;;  %v2175_v31 = vld [vmem:[#allocation12] sm:$0xff] }
 0x67b   :  { %2015 = vmatprep.subr.mxu0 %v1978_v33  ;;  %v4207_v33 = vld [vmem:[#allocation21_spill] sm:$0xff] }
 0x67c   :  { %2016 = vmatpush1.msra.mxu0 %v1977_v35  ;;  %v4208_v35 = vld [vmem:[#allocation24_spill] sm:$0xff] }
 0x67d   :  { %2017 = vmatprep.subr.mxu0 %v1975_v24 }
 0x67e   :  { %2018 = vmatpush1.msra.mxu0 %v1974_v4 }
 0x67f   :  { %2019 = vmatprep.subr.mxu0 %v1972_v26  ;;  %v4209_v26 = vld [vmem:[#allocation39_spill] sm:$0xff] }
 0x680   :  { %2020 = vmatpush1.msra.mxu0 %v1971_v52 }
 0x681   :  { %2021 = vmatprep.subr.mxu0 %v1969_v37 }
 0x682   :  { %2022 = vmatpush1.msra.mxu0 %v1968_v47 }
 0x683   :  { %2023 = vmatprep.subr.mxu0 %v1966_v49 }
 0x684   :  { %2024 = vmatpush1.msra.mxu0 %v1965_v51  ;;  %v4210_v51 = vld [vmem:[#allocation40_spill] sm:$0xff] }
 0x685   :  { %2025 = vmatprep.subr.mxu0 %v1963_v53 }
 0x686   :  { %2026 = vmatpush1.msra.mxu0 %v1962_v10 }
 0x687   :  { %2027 = vmatprep.subr.mxu0 %v1960_v11 }
 0x688   :  { %2028 = vmatpush1.msra.mxu0 %v1959_v39 }
 0x689   :  { %2029 = vmatprep.subr.mxu0 %v1957_v43 }
 0x68a   :  { %2030 = vmatpush1.msra.mxu0 %v1956_v55 }
 0x68b   :  { %2031 = vmatprep.subr.mxu0 %v1954_v57 }
 0x68c   :  { %2032 = vmatpush1.msra.mxu0 %v1953_v41 }
 0x68d   :  { %2870 = vmatprep.subr.mxu0 %v2190_v0 }
 0x717   :  { %v1850_v54 = vpop.f32.mrf.mxu0  ;;  %v1921_v56 = vpop.f32.mrf.mxu1 }
 0x718   :  { %v1925_v60 = vadd.f32 %v1850_v54, %v4203_v58  ;;  %v1939_v50 = vadd.f32 %v4035_v46, %v1921_v56 }
 0x719   :  { %v2834_v62 = vpop.f32.mrf.mxu1  ;;  %v1852_v2 = vpop.f32.mrf.mxu0 }
 0x71a   :  { %v2357_v1 = vmul.f32 -1.442695, %v1925_v60  ;;  %v1932_v9 = vadd.f32 %v1852_v2, %v4204_v5  ;;  %v4211_v60 = vld [vmem:[#allocation43_spill] sm:$0xff] }
 0x71c   :  { %2987 = vpow2.f32 %v2357_v1  ;;  %v2358_v12 = vmul.f32 -1.442695, %v1932_v9 }
 0x71e   :  { %2989 = vpow2.f32 %v2358_v12 }
 0x729   :  { %v2988_v14 = vpop.eup %2987 }
 0x72a   :  { %v1929_v16 = vadd.f32 1.0, %v2988_v14 }
 0x72b   :  { %v2990_v18 = vpop.eup %2989 }
 0x72c   :  { %2991 = vrcp.f32 %v1929_v16  ;;  %v1936_v44 = vadd.f32 1.0, %v2990_v18 }
 0x72e   :  { %2993 = vrcp.f32 %v1936_v44 }
 0x739   :  { %v2992_v42 = vpop.eup %2991 }
 0x73a   :  { %v1940_v40 = vmul.f32 %v2992_v42, %v1939_v50 }
 0x73b   :  { %v2994_v36 = vpop.eup %2993 }
 0x73c   :  { %v1941_v59 = vadd.f32 %v1940_v40, %v4205_v20  ;;  %v1943_v28 = vsub.f32 1.0, %v2994_v36  ;;  %v1945_v34 = vmul.f32 %v2994_v36, %v4040_v8 }
 0x73e   :  { %2995 = vtanh.f32 %v1941_v59 }
 0x74b   :  { %v2996_v61 = vpop.eup %2995 }
 0x74c   :  { %v1944_v63 = vmul.f32 %v2996_v61, %v1943_v28 }
 0x74e   :  { %v4083_v30 = vadd.f32 %v1945_v34, %v1944_v63 }
 0x750   :  { %2066 = vmatmul.mubr.f32.vlgmr.msra.gmra.mxu0 %v4083_v30  ;;  %2868 = vmatmul.mubr.f32.vlgmr.msra.gmra.mxu1 %v4083_v30 }
 0x751   :  { %2871 = vmatpush3.msra.mxu0 %v2190_v0  ;;  %2902 = vmatprep.mubr.f32.mxu0 %v4206_v6 }
 0x752   :  { %2872 = vmatprep.subr.mxu0 %v2189_v48 }
 0x753   :  { %2873 = vmatpush3.msra.mxu0 %v2189_v48 }
 0x754   :  { %2874 = vmatprep.subr.mxu0 %v2188_v7 }
 0x755   :  { %2875 = vmatpush3.msra.mxu0 %v2188_v7 }
 0x756   :  { %2876 = vmatprep.subr.mxu0 %v2187_v3 }
 0x757   :  { %2877 = vmatpush3.msra.mxu0 %v2187_v3 }
 0x758   :  { %2878 = vmatprep.subr.mxu0 %v2186_v22 }
 0x759   :  { %2879 = vmatpush3.msra.mxu0 %v2186_v22 }
 0x75a   :  { %2880 = vmatprep.subr.mxu0 %v2185_v13 }
 0x75b   :  { %2881 = vmatpush3.msra.mxu0 %v2185_v13 }
 0x75c   :  { %2882 = vmatprep.subr.mxu0 %v2184_v15 }
 0x75d   :  { %2883 = vmatpush3.msra.mxu0 %v2184_v15 }
 0x75e   :  { %2884 = vmatprep.subr.mxu0 %v2183_v17 }
 0x75f   :  { %2885 = vmatpush3.msra.mxu0 %v2183_v17 }
 0x760   :  { %2886 = vmatprep.subr.mxu0 %v2182_v19 }
 0x761   :  { %2887 = vmatpush3.msra.mxu0 %v2182_v19 }
 0x762   :  { %2888 = vmatprep.subr.mxu0 %v2181_v21 }
 0x763   :  { %2889 = vmatpush3.msra.mxu0 %v2181_v21 }
 0x764   :  { %2890 = vmatprep.subr.mxu0 %v2180_v23 }
 0x765   :  { %2891 = vmatpush3.msra.mxu0 %v2180_v23 }
 0x766   :  { %2892 = vmatprep.subr.mxu0 %v2179_v38 }
 0x767   :  { %2893 = vmatpush3.msra.mxu0 %v2179_v38 }
 0x768   :  { %2894 = vmatprep.subr.mxu0 %v2178_v25 }
 0x769   :  { %2895 = vmatpush3.msra.mxu0 %v2178_v25 }
 0x76a   :  { %2896 = vmatprep.subr.mxu0 %v2177_v27 }
 0x76b   :  { %2897 = vmatpush3.msra.mxu0 %v2177_v27 }
 0x76c   :  { %2898 = vmatprep.subr.mxu0 %v2176_v29 }
 0x76d   :  { %2899 = vmatpush3.msra.mxu0 %v2176_v29 }
 0x76e   :  { %2900 = vmatprep.subr.mxu0 %v2175_v31 }
 0x76f   :  { %2901 = vmatpush3.msra.mxu0 %v2175_v31 }
 0x770   :  { %2903 = vmatmul.mubr.f32.vlgmr.msra.gmra.mxu0 %v4207_v33 }
 0x771   :  { %2905 = vmatprep.mubr.f32.mxu0 %v4208_v35 }
 0x774   :  { %2906 = vmatmul.mubr.f32.gmra.mxu0 %v3884_v32 }
 0x775   :  { %2908 = vmatprep.mubr.f32.mxu0 %v3960_v45 }
 0x778   :  { %2909 = vmatmul.mubr.f32.gmra.mxu0 %v4040_v8  ;;  %v2361_v8 = vld [vmem:[%s4118_s7] ss:$0 sm:$0xff]  ;;  %s3169_s7 = smov [#allocation14]  }
 0x779   :  { %2911 = vmatprep.mubr.f32.mxu0 %v4083_v30  ;;  %s2329_s19 = sshll.u32 %s3169_s7, 4  ;;  %s2330_s19 = int_to_ptr.vmem [resolvable:$true] %s2329_s19 }
 0x77a   :  { %s3108_s20 = scalar_lea.vmem %s2330_s19, 128  ;;  %p3113_p12 = scmp.lt.s32.totalorder %s2330_s19, %s2330_s19 }
 0x77b   :  { %p3109_p11 = scmp.ne.s32.totalorder %s2330_s19, %s3108_s20  ;;  %p3114_p13 = scmp.lt.s32.totalorder %s3108_s20, %s3108_s20 }
 0x77d   :  { %p3115_p0 = por %p3114_p13, %p3113_p12 }
 0x77f   :  { %p3116_p1 = pnand %p3115_p0, %p3109_p11 }
 0x810   :  { %v2067_v24 = vpop.f32.mrf.mxu0  ;;  %v2138_v4 = vpop.f32.mrf.mxu1 }
 0x811   :  { %v2142_v52 = vadd.f32 %v2067_v24, %v4209_v26  ;;  %v2156_v55 = vadd.f32 %v4035_v46, %v2138_v4 }
 0x812   :  { %v2869_v37 = vpop.f32.mrf.mxu1  ;;  %v2069_v49 = vpop.f32.mrf.mxu0 }
 0x813   :  { %v2359_v47 = vmul.f32 -1.442695, %v2142_v52  ;;  %v2149_v53 = vadd.f32 %v2069_v49, %v4210_v51 }
 0x815   :  { %2997 = vpow2.f32 %v2359_v47  ;;  %v2360_v10 = vmul.f32 -1.442695, %v2149_v53 }
 0x817   :  { %2999 = vpow2.f32 %v2360_v10 }
 0x822   :  { %v2998_v11 = vpop.eup %2997 }
 0x823   :  { %v2146_v32 = vadd.f32 1.0, %v2998_v11 }
 0x824   :  { %v3000_v45 = vpop.eup %2999 }
 0x825   :  { %3001 = vrcp.f32 %v2146_v32  ;;  %v2153_v39 = vadd.f32 1.0, %v3000_v45 }
 0x827   :  { %3003 = vrcp.f32 %v2153_v39 }
 0x830   :  { %v2904_v43 = vpop.f32.mrf.mxu0 }
 0x831   :  { %v2270_v57 = vadd.f32 %v2904_v43, %v2361_v8 }
 0x832   :  { %v3002_v41 = vpop.eup %3001  ;;  %v2264_v0 = vpop.f32.mrf.mxu0 }
 0x833   :  { %v2157_v54 = vmul.f32 %v3002_v41, %v2156_v55  ;;  %2304 = vst [vmem:[#allocation13 + $0x8] sm:$0xff] %v2270_v57  ;;  %v2265_v56 = vadd.f32 %v2361_v8, %v2264_v0 }
 0x834   :  { %v2907_v58 = vpop.f32.mrf.mxu0  ;;  %v3004_v16 = vpop.eup %3003 }
 0x835   :  { %v2158_v62 = vadd.f32 %v2157_v54, %v4211_v60  ;;  %2303 = vst [vmem:[#allocation13] sm:$0xff] %v2265_v56  ;;  %v2280_v1 = vadd.f32 %v2907_v58, %v2361_v8  ;;  %v2160_v18 = vsub.f32 1.0, %v3004_v16  ;;  %v2162_v42 = vmul.f32 %v3004_v16, %v4083_v30 }
 0x836   :  { %v2274_v2 = vpop.f32.mrf.mxu0 }
 0x837   :  { %3005 = vtanh.f32 %v2158_v62  ;;  %2306 = vst [vmem:[#allocation13 + $0x18] sm:$0xff] %v2280_v1  ;;  %v2275_v5 = vadd.f32 %v2361_v8, %v2274_v2 }
 0x838   :  { %v2910_v9 = vpop.f32.mrf.mxu0 }
 0x839   :  { %2305 = vst [vmem:[#allocation13 + $0x10] sm:$0xff] %v2275_v5  ;;  %v2290_v12 = vadd.f32 %v2910_v9, %v2361_v8 }
 0x83a   :  { %v2284_v46 = vpop.f32.mrf.mxu0 }
 0x83b   :  { %2308 = vst [vmem:[#allocation13 + $0x28] sm:$0xff] %v2290_v12  ;;  %v2285_v14 = vadd.f32 %v2361_v8, %v2284_v46 }
 0x83d   :  { %2307 = vst [vmem:[#allocation13 + $0x20] sm:$0xff] %v2285_v14 }
 0x844   :  { %v3006_v44 = vpop.eup %3005 }
 0x845   :  { %v2161_v50 = vmul.f32 %v3006_v44, %v2160_v18 }
 0x847   :  { %v2163_v40 = vadd.f32 %v2162_v42, %v2161_v50 }
 0x849   :  { %2912 = vmatmul.mubr.f32.gmra.mxu0 %v2163_v40  ;;  %2166 = vst [vmem:[#allocation14] sm:$0xff] %v2163_v40 }
 0x84a   :  { %3119 = shalt.err (!%p3116_p1)
}
 0x84b   :  { %2332 = dma.vmem_to_hbm [thread:$0]  %s2330_s19, 128, %s4120_s9, [#allocation15]  }
 0x84c   :  { %s3170_s23 = smov [#allocation13]  }
 0x84d   :  { %s2316_s24 = sshll.u32 %s3170_s23, 4  ;;  %s2317_s24 = int_to_ptr.vmem [resolvable:$true] %s2316_s24 }
 0x84e   :  { %s3128_s26 = scalar_lea.vmem %s2317_s24, 1024  ;;  %p3133_p3 = scmp.lt.s32.totalorder %s2317_s24, %s2317_s24 }
 0x84f   :  { %p3129_p2 = scmp.ne.s32.totalorder %s2317_s24, %s3128_s26  ;;  %p3134_p4 = scmp.lt.s32.totalorder %s3128_s26, %s3128_s26 }
 0x851   :  { %p3135_p5 = por %p3134_p4, %p3133_p3 }
 0x853   :  { %p3136_p6 = pnand %p3135_p5, %p3129_p2 }
 0x909   :  { %v2913_v20 = vpop.f32.mrf.mxu0 }
 0x90a   :  { %v2300_v59 = vadd.f32 %v2913_v20, %v2361_v8 }
 0x90b   :  { %v2294_v36 = vpop.f32.mrf.mxu0 }
 0x90c   :  { %2310 = vst [vmem:[#allocation13 + $0x38] sm:$0xff] %v2300_v59  ;;  %v2295_v28 = vadd.f32 %v2361_v8, %v2294_v36 }
 0x90e   :  { %2309 = vst [vmem:[#allocation13 + $0x30] sm:$0xff] %v2295_v28 }
 0x90f   :  { %3139 = shalt.err (!%p3136_p6)
}
 0x910   :  { %2322 = dma.vmem_to_hbm [thread:$0]  %s2317_s24, 1024, %s4119_s8, [#allocation6], %s3163_s1, %s3163_s1, %s3164_s25  }
 0x911   :  { %3154 = dma.done.wait [#allocation6], 1024  }
 0x912   :  { %3155 = vsyncadd [#allocation6], 4294966272 }
 0x913   :  { %3156 = dma.done.wait [#allocation15], 128  }
 0x914   :  { %3157 = vsyncadd [#allocation15], 4294967168 }
 0x915   :  { %2339 = vsyncpa [#allocation5], 1 }
 0x916   :  { %2340 = vsyncpa [#allocation8], 1 }
 0x917   :  { %2341 = vsyncpa [#allocation11], 1 }
 0x918   :  { %2342 = vsyncpa [#allocation6], 1 }
 0x919   :  { %2343 = vsyncpa [#allocation15], 1 }

</bundles_post_ra>
